<compile_context>
chip_gen: v5e
topology: v5e:2x2
jax: 0.10.0
libtpu: 0.0.40
codegen_flags: <defaults>
</compile_context>

<pallas_src>
import functools
import math

import jax
import jax.numpy as jnp
from jax.experimental import pallas as pl
from jax.experimental.pallas import tpu as pltpu

BN_EPS = 1e-5
BN_SCALE = 1.0 / math.sqrt(1.0 + BN_EPS)   # gamma=1, beta=0, mean=0, var=1


# ---------------------------------------------------------------------------
# tiling helpers
# ---------------------------------------------------------------------------
def _rup(x, m):
    return -(-x // m) * m


def _choose_m_tile(mp, cap=512):
    tm = 8
    for t in range(8, min(mp, cap) + 1, 8):
        if mp % t == 0:
            tm = t
    return tm


def _choose_k_tile(k, cap=1536, single_cap=2304):
    best = None
    t = 128
    while t <= min(k, cap):
        if k % t == 0:
            best = t
        t += 128
    if best is not None:
        return best
    if k <= single_cap:
        return k          # single full-K block (allowed: equals full array dim)
    return cap            # would force K padding (unused by this network)


def _choose_n_tile(np_):
    # lane-dense (>=128) output tiles; prefer >=2 N blocks (dual-TC on v7x)
    for t in (512, 256, 128):
        if np_ % t == 0 and np_ // t >= 2:
            return t
    return 128


# ---------------------------------------------------------------------------
# Pallas kernels
# ---------------------------------------------------------------------------
def _mm_kernel(*refs, act, has_res):
    """act((A @ W) * scale + shift [+ residual]); f32 accumulation over K grid."""
    if has_res:
        a_ref, w_ref, s_ref, t_ref, r_ref, o_ref, acc_ref = refs
    else:
        a_ref, w_ref, s_ref, t_ref, o_ref, acc_ref = refs
        r_ref = None

    @pl.when(pl.program_id(2) == 0)
    def _():
        acc_ref[...] = jnp.zeros_like(acc_ref)

    acc_ref[...] += jnp.dot(a_ref[...], w_ref[...],
                            preferred_element_type=jnp.float32)

    @pl.when(pl.program_id(2) == pl.num_programs(2) - 1)
    def _():
        y = acc_ref[...] * s_ref[...] + t_ref[...]
        if has_res:
            y = y + r_ref[...].astype(jnp.float32)
        if act == "relu":
            y = jnp.maximum(y, 0.0)
        elif act == "sigmoid":
            y = 1.0 / (1.0 + jnp.exp(-y))
        o_ref[...] = y.astype(o_ref.dtype)


def _group_mm_kernel(a_ref, w_ref, s_ref, t_ref, o_ref):
    # a: (G, tm, Kg)  w: (G, Kg, Ng)  s/t: (G, 1, Ng)  o: (G, tm, Ng)
    y = jnp.einsum("gmk,gkn->gmn", a_ref[...], w_ref[...],
                   preferred_element_type=jnp.float32)
    y = y * s_ref[...] + t_ref[...]
    o_ref[...] = jnp.maximum(y, 0.0).astype(o_ref.dtype)


def _dw_expand_kernel(x_ref, w_ref, o_ref, *, hh, ww, e, c):
    # depthwise grouped conv (groups = C, cout_g = e), relu.  Pure VPU work.
    xb = x_ref[0].astype(jnp.float32)        # (hh+2, ww+2, c)
    wv = w_ref[...]                          # (e*9, c) f32
    for j in range(e):
        acc = jnp.zeros((hh, ww, c), jnp.float32)
        for di in range(3):
            for dj in range(3):
                acc = acc + xb[di:di + hh, dj:dj + ww, :] * wv[j * 9 + di * 3 + dj]
        o_ref[0, :, :, j * c:(j + 1) * c] = jnp.maximum(acc, 0.0).astype(o_ref.dtype)


def _dw_contract_kernel(y_ref, w_ref, o_ref, *, hh, ww, e, c):
    # depthwise grouped conv (groups = C, cin_g = e, cout_g = 1), relu.
    yb = y_ref[0].astype(jnp.float32)        # (hh+2, ww+2, e*c)
    wv = w_ref[...]                          # (e*9, c) f32
    acc = jnp.zeros((hh, ww, c), jnp.float32)
    for j in range(e):
        for di in range(3):
            for dj in range(3):
                acc = acc + (yb[di:di + hh, dj:dj + ww, j * c:(j + 1) * c]
                             * wv[j * 9 + di * 3 + dj])
    o_ref[0] = jnp.maximum(acc, 0.0).astype(o_ref.dtype)


def _maxpool_kernel(x_ref, o_ref, *, ho, wo):
    # x: (1, 4*(ho+1), wo+1, C) even/odd planes [ee, eo, oe, oo] of the padded map
    hq = ho + 1
    xb = x_ref[0]
    ee = xb[0:hq]
    eo = xb[hq:2 * hq]
    oe = xb[2 * hq:3 * hq]
    oo = xb[3 * hq:4 * hq]
    m = ee[:ho, :wo]
    for v in (ee[:ho, 1:wo + 1], ee[1:ho + 1, :wo], ee[1:ho + 1, 1:wo + 1],
              eo[:ho, :wo], eo[1:ho + 1, :wo],
              oe[:ho, :wo], oe[:ho, 1:wo + 1],
              oo[:ho, :wo]):
        m = jnp.maximum(m, v)
    o_ref[0] = m.astype(o_ref.dtype)


def _mulpool_kernel(x_ref, w_ref, o_ref, *, inv_hw):
    prod = x_ref[0].astype(jnp.float32) * w_ref[0].astype(jnp.float32)
    o_ref[...] = (jnp.sum(prod, axis=(0, 1)) * inv_hw)[None, None, :]


# ---------------------------------------------------------------------------
# Pallas wrappers
# ---------------------------------------------------------------------------
def matmul_fused(a, pk, act="none", residual=None, out_dtype=jnp.bfloat16):
    """act((a @ Wpacked) * scale + shift [+ residual]) on the MXU (bf16 x bf16 -> f32)."""
    w, s, t = pk["w"], pk["s"], pk["t"]
    kp, np_ = w.shape
    tk, tn = pk["tk"], pk["tn"]
    m, k = a.shape
    assert k == pk["K"], (k, pk["K"])
    a = a.astype(jnp.bfloat16)
    if kp != k:
        a = jnp.pad(a, ((0, 0), (0, kp - k)))
    mp = _rup(m, 8)
    if mp != m:
        a = jnp.pad(a, ((0, mp - m), (0, 0)))
    tm = _choose_m_tile(mp)

    args = [a, w, s, t]
    in_specs = [
        pl.BlockSpec((tm, tk), lambda i, j, kk: (i, kk)),
        pl.BlockSpec((tk, tn), lambda i, j, kk: (kk, j)),
        pl.BlockSpec((1, tn), lambda i, j, kk: (0, j)),
        pl.BlockSpec((1, tn), lambda i, j, kk: (0, j)),
    ]
    has_res = residual is not None
    if has_res:
        assert mp == m and np_ == pk["N"], "residual path requires unpadded M/N"
        args.append(residual.astype(jnp.bfloat16))
        in_specs.append(pl.BlockSpec((tm, tn), lambda i, j, kk: (i, j)))

    out = pl.pallas_call(
        functools.partial(_mm_kernel, act=act, has_res=has_res),
        out_shape=jax.ShapeDtypeStruct((mp, np_), out_dtype),
        grid_spec=pltpu.PrefetchScalarGridSpec(
            num_scalar_prefetch=0,
            grid=(mp // tm, np_ // tn, kp // tk),   # K innermost ("arbitrary")
            in_specs=in_specs,
            out_specs=pl.BlockSpec((tm, tn), lambda i, j, kk: (i, j)),
            scratch_shapes=[pltpu.VMEM((tm, tn), jnp.float32)],
        ),
        compiler_params=pltpu.CompilerParams(
            dimension_semantics=("parallel", "parallel", "arbitrary"),
            vmem_limit_bytes=32 * 1024 * 1024),
    )(*args)
    return out[:m, :pk["N"]]


def _im2col_nhwc(x, kh, kw, stride, pad):
    # TODO(synk): fold the patch extraction into the GEMM kernel (manual DMA of
    # shifted windows) to avoid the kh*kw-fold HBM materialization of A.
    b, h, w, c = x.shape
    xp = jnp.pad(x, ((0, 0), (pad, pad), (pad, pad), (0, 0)))
    ho = (h + 2 * pad - kh) // stride + 1
    wo = (w + 2 * pad - kw) // stride + 1
    cols = [xp[:, i:i + stride * (ho - 1) + 1:stride,
               j:j + stride * (wo - 1) + 1:stride, :]
            for i in range(kh) for j in range(kw)]
    a = jnp.concatenate(cols, axis=-1)            # K order: (tap, cin)
    return a.reshape(b * ho * wo, kh * kw * c), ho, wo


def conv_apply(pk, x, *, stride=1, padding=0, act="relu", residual=None):
    """Dense conv as an im2col GEMM; NHWC in, NHWC out (bf16)."""
    b = x.shape[0]
    kh, kw = pk["kh"], pk["kw"]
    if kh == 1 and kw == 1 and padding == 0:
        xs = x if stride == 1 else x[:, ::stride, ::stride, :]
        ho, wo = xs.shape[1], xs.shape[2]
        a = xs.reshape(b * ho * wo, xs.shape[3])    # free reshape, no im2col
    else:
        a, ho, wo = _im2col_nhwc(x, kh, kw, stride, padding)
    res2d = None
    if residual is not None:
        res2d = residual.reshape(b * ho * wo, residual.shape[3])
    out = matmul_fused(a, pk, act=act, residual=res2d)
    return out.reshape(b, ho, wo, pk["N"])


def group_conv3x3(pk, x):
    """Grouped 3x3/s1/p1 conv + BN + ReLU via a batched per-group GEMM kernel."""
    b, h, w, c = x.shape
    g, kg, ng = pk["groups"], pk["kg"], pk["ng"]
    assert c == g * pk["cin_g"]
    xp = jnp.pad(x, ((0, 0), (1, 1), (1, 1), (0, 0)))
    cols = [xp[:, i:i + h, j:j + w, :] for i in range(3) for j in range(3)]
    a = jnp.stack(cols, axis=-1)                    # (B, H, W, C, 9)
    m = b * h * w
    a = a.reshape(m, g, kg)                         # per-group K order: (cin_g, tap)
    a = jnp.transpose(a, (1, 0, 2))                 # (G, M, Kg)
    mp = _rup(m, 8)
    if mp != m:
        a = jnp.pad(a, ((0, 0), (0, mp - m), (0, 0)))
    tm = _choose_m_tile(mp, cap=256)
    out = pl.pallas_call(
        _group_mm_kernel,
        out_shape=jax.ShapeDtypeStruct((g, mp, ng), jnp.bfloat16),
        grid_spec=pltpu.PrefetchScalarGridSpec(
            num_scalar_prefetch=0,
            grid=(mp // tm,),
            in_specs=[pl.BlockSpec((g, tm, kg), lambda i: (0, i, 0)),
                      pl.BlockSpec((g, kg, ng), lambda i: (0, 0, 0)),
                      pl.BlockSpec((g, 1, ng), lambda i: (0, 0, 0)),
                      pl.BlockSpec((g, 1, ng), lambda i: (0, 0, 0))],
            out_specs=pl.BlockSpec((g, tm, ng), lambda i: (0, i, 0)),
        ),
        compiler_params=pltpu.CompilerParams(dimension_semantics=("parallel",)),
    )(a.astype(jnp.bfloat16), pk["w"], pk["s"], pk["t"])
    return jnp.transpose(out[:, :m, :], (1, 0, 2)).reshape(b, h, w, g * ng)


def depthwise_expand(x, wp, e):
    """Conv2d(C, e*C, groups=C, k=3, p=1, bias=False) + ReLU as a VPU kernel."""
    b, h, w, c = x.shape
    xp = jnp.pad(x, ((0, 0), (1, 1), (1, 1), (0, 0)))
    return pl.pallas_call(
        functools.partial(_dw_expand_kernel, hh=h, ww=w, e=e, c=c),
        out_shape=jax.ShapeDtypeStruct((b, h, w, e * c), jnp.bfloat16),
        grid_spec=pltpu.PrefetchScalarGridSpec(
            num_scalar_prefetch=0,
            grid=(b,),
            in_specs=[pl.BlockSpec((1, h + 2, w + 2, c), lambda i: (i, 0, 0, 0)),
                      pl.BlockSpec((e * 9, c), lambda i: (0, 0))],
            out_specs=pl.BlockSpec((1, h, w, e * c), lambda i: (i, 0, 0, 0)),
        ),
        compiler_params=pltpu.CompilerParams(dimension_semantics=("parallel",)),
    )(xp, wp)


def depthwise_contract(y, wp, e):
    """Conv2d(e*C, C, groups=C, k=3, p=1, bias=False) + ReLU as a VPU kernel."""
    b, h, w, ec = y.shape
    c = ec // e
    yp = jnp.pad(y, ((0, 0), (1, 1), (1, 1), (0, 0)))
    return pl.pallas_call(
        functools.partial(_dw_contract_kernel, hh=h, ww=w, e=e, c=c),
        out_shape=jax.ShapeDtypeStruct((b, h, w, c), jnp.bfloat16),
        grid_spec=pltpu.PrefetchScalarGridSpec(
            num_scalar_prefetch=0,
            grid=(b,),
            in_specs=[pl.BlockSpec((1, h + 2, w + 2, ec), lambda i: (i, 0, 0, 0)),
                      pl.BlockSpec((e * 9, c), lambda i: (0, 0))],
            out_specs=pl.BlockSpec((1, h, w, c), lambda i: (i, 0, 0, 0)),
        ),
        compiler_params=pltpu.CompilerParams(dimension_semantics=("parallel",)),
    )(yp, wp)


def maxpool_3x3_s2_p1(x):
    b, h, w, c = x.shape
    assert h % 2 == 0 and w % 2 == 0
    ho, wo = h // 2, w // 2
    hq, wq = ho + 1, wo + 1
    xp = jnp.pad(x, ((0, 0), (1, 1), (1, 1), (0, 0)), constant_values=-jnp.inf)
    planes = xp.reshape(b, hq, 2, wq, 2, c).transpose(0, 2, 4, 1, 3, 5)
    planes = planes.reshape(b, 4 * hq, wq, c)       # [ee, eo, oe, oo]
    return pl.pallas_call(
        functools.partial(_maxpool_kernel, ho=ho, wo=wo),
        out_shape=jax.ShapeDtypeStruct((b, ho, wo, c), x.dtype),
        grid_spec=pltpu.PrefetchScalarGridSpec(
            num_scalar_prefetch=0,
            grid=(b,),
            in_specs=[pl.BlockSpec((1, 4 * hq, wq, c), lambda i: (i, 0, 0, 0))],
            out_specs=pl.BlockSpec((1, ho, wo, c), lambda i: (i, 0, 0, 0)),
        ),
        compiler_params=pltpu.CompilerParams(dimension_semantics=("parallel",)),
    )(planes)


def mul_avgpool(x, w):
    """Global-average-pool(x * w) over spatial dims; (B, H, W, C) -> (B, C)."""
    b, h, ww, c = x.shape
    out = pl.pallas_call(
        functools.partial(_mulpool_kernel, inv_hw=1.0 / (h * ww)),
        out_shape=jax.ShapeDtypeStruct((b, 1, c), jnp.float32),
        grid_spec=pltpu.PrefetchScalarGridSpec(
            num_scalar_prefetch=0,
            grid=(b,),
            in_specs=[pl.BlockSpec((1, h, ww, c), lambda i: (i, 0, 0, 0)),
                      pl.BlockSpec((1, h, ww, c), lambda i: (i, 0, 0, 0))],
            out_specs=pl.BlockSpec((1, 1, c), lambda i: (i, 0, 0)),
        ),
        compiler_params=pltpu.CompilerParams(dimension_semantics=("parallel",)),
    )(x, w)
    return out.reshape(b, c)


def space_to_channel(x, nh, nw):
    """Matches torch chunk(dim=2)/chunk(dim=3)/cat(dim=1) ordering (NHWC)."""
    b, h, w, c = x.shape
    hh, ww = h // nh, w // nw
    x = x.reshape(b, nh, hh, nw, ww, c)
    x = x.transpose(0, 2, 4, 1, 3, 5)               # (B, hh, ww, nh, nw, C)
    return x.reshape(b, hh, ww, nh * nw * c)


# ---------------------------------------------------------------------------
# Deterministic parameter construction + persistent weight packing
# ---------------------------------------------------------------------------
_KEY = [jax.random.PRNGKey(1234)]


def _nextkey():
    _KEY[0], k = jax.random.split(_KEY[0])
    return k


def make_conv(cout, cin_g, kh, kw):
    fan_in = cin_g * kh * kw
    return jax.random.normal(_nextkey(), (cout, cin_g, kh, kw),
                             jnp.float32) * math.sqrt(2.0 / fan_in)


def make_bias(c):
    return jax.random.normal(_nextkey(), (c,), jnp.float32) * 0.01


def make_linear(cin, cout):
    w = jax.random.normal(_nextkey(), (cin, cout), jnp.float32) * math.sqrt(2.0 / cin)
    b = jax.random.normal(_nextkey(), (cout,), jnp.float32) * 0.01
    return w, b


def pack_gemm(wm, bias=None, bn=True):
    k, n = wm.shape
    if bn:
        scale = jnp.full((n,), BN_SCALE, jnp.float32)
        shift = scale * bias if bias is not None else jnp.zeros((n,), jnp.float32)
    else:
        scale = jnp.ones((n,), jnp.float32)
        shift = bias.astype(jnp.float32) if bias is not None else jnp.zeros((n,), jnp.float32)
    np_ = _rup(n, 128)
    tk = _choose_k_tile(k)
    kp = _rup(k, tk)
    return {"w": jnp.pad(wm, ((0, kp - k), (0, np_ - n))).astype(jnp.bfloat16),
            "s": jnp.pad(scale, (0, np_ - n)).reshape(1, np_),
            "t": jnp.pad(shift, (0, np_ - n)).reshape(1, np_),
            "K": k, "N": n, "tk": tk, "tn": _choose_n_tile(np_),
            "kh": 1, "kw": 1}


def pack_conv(w_oihw, bias=None, bn=True):
    cout, cin, kh, kw = w_oihw.shape
    wm = jnp.transpose(w_oihw, (2, 3, 1, 0)).reshape(kh * kw * cin, cout)
    pk = pack_gemm(wm, bias=bias, bn=bn)
    pk["kh"], pk["kw"] = kh, kw
    return pk


def pack_group_conv(w, groups):
    cout, cin_g, kh, kw = w.shape
    ng = cout // groups
    kg = cin_g * kh * kw
    wp = jnp.transpose(w.reshape(groups, ng, cin_g, kh, kw),
                       (0, 2, 3, 4, 1)).reshape(groups, kg, ng)
    return {"w": wp.astype(jnp.bfloat16),
            "s": jnp.full((groups, 1, ng), BN_SCALE, jnp.float32),
            "t": jnp.zeros((groups, 1, ng), jnp.float32),
            "groups": groups, "cin_g": cin_g, "ng": ng, "kg": kg}


def pack_dw_expand(w, e):
    # (C*e, 1, 3, 3), out channel c*e+j  ->  (e*9, C) with row = j*9 + di*3 + dj
    c = w.shape[0] // e
    wr = w.reshape(c, e, 1, 3, 3)[:, :, 0]
    return jnp.transpose(wr, (1, 2, 3, 0)).reshape(e * 9, c).astype(jnp.float32)


def pack_dw_contract(w):
    # (C, e, 3, 3)  ->  (e*9, C) with row = j*9 + di*3 + dj
    c, e = w.shape[0], w.shape[1]
    return jnp.transpose(w, (1, 2, 3, 0)).reshape(e * 9, c).astype(jnp.float32)


def build_params():
    p = {"conv1": pack_conv(make_conv(64, 3, 7, 7))}
    state = {"inplanes": 64}

    def bottleneck(planes, stride, has_ds):
        inp = state["inplanes"]
        blk = {"stride": stride,
               "c1": pack_conv(make_conv(planes, inp, 1, 1)),
               "c2": pack_conv(make_conv(planes, planes, 3, 3)),
               "c3": pack_conv(make_conv(planes * 4, planes, 1, 1))}
        if has_ds:
            blk["cd"] = pack_conv(make_conv(planes * 4, inp, 1, 1))
        state["inplanes"] = planes * 4
        return blk

    def layer(planes, blocks, stride):
        blks = [bottleneck(planes, stride,
                           stride != 1 or state["inplanes"] != planes * 4)]
        for _ in range(1, blocks):
            blks.append(bottleneck(planes, 1, False))
        return blks

    p["layer1"] = layer(64, 3, 1)
    p["layer2"] = layer(128, 4, 2)
    p["layer3"] = layer(256, 6, 2)
    p["layer4"] = layer(512, 3, 2)

    p["f1e1"] = pack_conv(make_conv(16, 256, 1, 1))
    p["f1e2"] = pack_group_conv(make_conv(64, 1024 // 16, 3, 3), 16)
    p["f2e1"] = pack_conv(make_conv(32, 512, 1, 1))
    p["f2e2"] = pack_group_conv(make_conv(64, 512 // 32, 3, 3), 32)
    p["f3e1"] = pack_conv(make_conv(64, 1024, 1, 1))
    p["f3e2"] = pack_group_conv(make_conv(64, 256 // 64, 3, 3), 64)
    p["f4e"] = pack_conv(make_conv(320, 2048, 3, 3))

    p["conv"] = [
        pack_conv(make_conv(256, 512, 1, 1), bias=make_bias(256)),
        pack_conv(make_conv(256, 256, 3, 3), bias=make_bias(256)),
        pack_conv(make_conv(256, 256, 3, 3), bias=make_bias(256)),
        pack_conv(make_conv(512, 256, 1, 1), bias=make_bias(512)),
    ]

    def make_att():
        return {"w1": pack_dw_expand(make_conv(2048, 1, 3, 3), 4),   # groups=512
                "w2": pack_dw_contract(make_conv(512, 4, 3, 3)),     # groups=512
                "w3": pack_conv(make_conv(256, 512, 1, 1), bn=False),
                "w4": pack_conv(make_conv(512, 256, 1, 1), bn=False)}

    p["att"] = make_att()
    p["att2"] = make_att()

    def make_head(nout):
        w1, b1 = make_linear(512, 256)
        w2, b2 = make_linear(256, 128)
        w3, b3 = make_linear(128, nout)
        return {"l1": pack_gemm(w1, bias=b1, bn=True),
                "l2": pack_gemm(w2, bias=b2, bn=True),
                "l3": pack_gemm(w3, bias=b3, bn=False)}

    p["dense"] = make_head(1)
    p["denseS"] = make_head(101)
    return p


# ---------------------------------------------------------------------------
# Forward pass
# ---------------------------------------------------------------------------
def apply_bottleneck(blk, x):
    out = conv_apply(blk["c1"], x, act="relu")
    out = conv_apply(blk["c2"], out, stride=blk["stride"], padding=1, act="relu")
    if "cd" in blk:
        residual = conv_apply(blk["cd"], x, stride=blk["stride"], act="none")
    else:
        residual = x
    # BN(conv3) + residual add + ReLU fused into the GEMM epilogue.
    return conv_apply(blk["c3"], out, act="relu", residual=residual)


def apply_head(hp, x):
    h = matmul_fused(x, hp["l1"], act="relu")
    # Dropout(0.5) is identity in eval mode.
    h = matmul_fused(h, hp["l2"], act="relu")
    return matmul_fused(h, hp["l3"], act="sigmoid", out_dtype=jnp.float32)


def apply_att(ap, z):
    z = depthwise_expand(z, ap["w1"], 4)
    z = depthwise_contract(z, ap["w2"], 4)
    z = conv_apply(ap["w3"], z, act="relu")
    z = conv_apply(ap["w4"], z, act="relu")
    return z


def iqanet_forward(p, img, enc_inputs):
    x = jnp.transpose(img, (0, 2, 3, 1)).astype(jnp.bfloat16)   # NCHW -> NHWC once
    x = conv_apply(p["conv1"], x, stride=2, padding=3, act="relu")
    x = maxpool_3x3_s2_p1(x)
    for blk in p["layer1"]:
        x = apply_bottleneck(blk, x)
    f1 = x
    for blk in p["layer2"]:
        x = apply_bottleneck(blk, x)
    f2 = x
    for blk in p["layer3"]:
        x = apply_bottleneck(blk, x)
    f3 = x
    for blk in p["layer4"]:
        x = apply_bottleneck(blk, x)
    f4 = x

    f1 = conv_apply(p["f1e1"], f1)
    f1 = space_to_channel(f1, 8, 8)
    f1 = group_conv3x3(p["f1e2"], f1)

    f2 = conv_apply(p["f2e1"], f2)
    f2 = space_to_channel(f2, 4, 4)
    f2 = group_conv3x3(p["f2e2"], f2)

    f3 = conv_apply(p["f3e1"], f3)
    f3 = space_to_channel(f3, 2, 2)
    f3 = group_conv3x3(p["f3e2"], f3)

    f4 = conv_apply(p["f4e"], f4, padding=1)

    x = jnp.concatenate([f1, f2, f3, f4], axis=-1)       # (B, H/32, W/32, 512)

    c = p["conv"]
    x = conv_apply(c[0], x)
    x = conv_apply(c[1], x, padding=1)
    x = conv_apply(c[2], x, padding=1)
    x = conv_apply(c[3], x)

    x1 = x   # self.isca == 0 -> channel-attention branch disabled

    attw = apply_att(p["att"], x)
    attw2 = apply_att(p["att2"], x)

    # TODO(synk): IQARegression (self.att_disc_calc) is not defined in the
    # provided source; 'E' is a passthrough of enc_inputs instead of its output.
    extraW = enc_inputs

    x2 = mul_avgpool(x1, attw)    # fused (x1 * attweight) + AdaptiveAvgPool2d((1,1))
    xs = mul_avgpool(x1, attw2)

    return {"Q": apply_head(p["dense"], x2),
            "S": apply_head(p["denseS"], xs),
            "E": extraW}


# ---------------------------------------------------------------------------
if __name__ == "__main__":
    params = build_params()

    key = jax.random.PRNGKey(0)
    k_img, k_enc = jax.random.split(key)
    img = jax.random.normal(k_img, (2, 3, 64, 64), jnp.float32)
    enc_inputs = jax.random.normal(k_enc, (2, 6), jnp.float32)

    out = iqanet_forward(params, img, enc_inputs)
    out = jax.block_until_ready(out)

    assert out["Q"].shape == (2, 1)
    assert out["S"].shape == (2, 101)
    assert out["E"].shape == (2, 6)
    assert all(bool(jnp.all(jnp.isfinite(v))) for v in (out["Q"], out["S"]))
    print("KERNEL_OK")
</pallas_src>

<mosaic_0001>
module attributes {stable_mosaic.version = 11 : i64} {
  func.func @_mm_kernel(%arg0: i32, %arg1: i32, %arg2: i32, %arg3: memref<512x147xbf16, #tpu.memory_space<vmem>>, %arg4: memref<147x128xbf16, #tpu.memory_space<vmem>>, %arg5: memref<1x128xf32, #tpu.memory_space<vmem>>, %arg6: memref<1x128xf32, #tpu.memory_space<vmem>>, %arg7: memref<512x128xbf16, #tpu.memory_space<vmem>>, %arg8: memref<512x128xf32, #tpu.memory_space<vmem>>) attributes {dimension_semantics = [#tpu.dimension_semantics<parallel>, #tpu.dimension_semantics<parallel>, #tpu.dimension_semantics<arbitrary>], iteration_bounds = array<i64: 4, 1, 1>, scalar_prefetch = 0 : i64, scratch_operands = 1 : i64, tpu.core_type = #tpu.core_type<tc>, window_params = [{transform_indices = @transform_0, window_bounds = array<i64: 512, 147>}, {transform_indices = @transform_1, window_bounds = array<i64: 147, 128>}, {transform_indices = @transform_2, window_bounds = array<i64: 1, 128>}, {transform_indices = @transform_3, window_bounds = array<i64: 1, 128>}, {transform_indices = @transform_4, window_bounds = array<i64: 512, 128>}]} {
    %c0_i32 = arith.constant 0 : i32
    %0 = arith.cmpi eq, %arg2, %c0_i32 : i32
    %1 = arith.extui %0 : i1 to i32
    %c0_i32_0 = arith.constant 0 : i32
    %2 = arith.cmpi ne, %1, %c0_i32_0 : i32
    scf.if %2 {
      %cst_10 = arith.constant 0.000000e+00 : f32
      %12 = vector.broadcast %cst_10 : f32 to vector<512x128xf32>
      %c0_11 = arith.constant 0 : index
      %c0_12 = arith.constant 0 : index
      %13 = vector.load %arg8[%c0_11, %c0_12] : memref<512x128xf32, #tpu.memory_space<vmem>>, vector<512x128xf32>
      tpu.vector_store %arg8[%c0_11, %c0_12], %12 {strides = array<i32>} : memref<512x128xf32, #tpu.memory_space<vmem>>, vector<512x128xf32>,
    } else {
    }
    %c0 = arith.constant 0 : index
    %c0_1 = arith.constant 0 : index
    %3 = vector.load %arg8[%c0, %c0_1] : memref<512x128xf32, #tpu.memory_space<vmem>>, vector<512x128xf32>
    %c0_2 = arith.constant 0 : index
    %c0_3 = arith.constant 0 : index
    %4 = vector.load %arg3[%c0_2, %c0_3] : memref<512x147xbf16, #tpu.memory_space<vmem>>, vector<512x147xbf16>
    %c0_4 = arith.constant 0 : index
    %c0_5 = arith.constant 0 : index
    %5 = vector.load %arg4[%c0_4, %c0_5] : memref<147x128xbf16, #tpu.memory_space<vmem>>, vector<147x128xbf16>
    %cst = arith.constant dense<0.000000e+00> : vector<512x128xf32>
    %6 = tpu.matmul %4, %5, %cst {dimension_numbers = #tpu.dot_dimension_numbers<[1], [0], [0], [1], [0, 0, 1, 1], [], []>} : vector<512x147xbf16>, vector<147x128xbf16>, vector<512x128xf32> -> vector<512x128xf32>
    %7 = arith.addf %3, %6 : vector<512x128xf32>
    %c0_6 = arith.constant 0 : index
    %c0_7 = arith.constant 0 : index
    %8 = vector.load %arg8[%c0_6, %c0_7] : memref<512x128xf32, #tpu.memory_space<vmem>>, vector<512x128xf32>
    tpu.vector_store %arg8[%c0_6, %c0_7], %7 {strides = array<i32>} : memref<512x128xf32, #tpu.memory_space<vmem>>, vector<512x128xf32>,
    %c0_i32_8 = arith.constant 0 : i32
    %9 = arith.cmpi eq, %arg2, %c0_i32_8 : i32
    %10 = arith.extui %9 : i1 to i32
    %c0_i32_9 = arith.constant 0 : i32
    %11 = arith.cmpi ne, %10, %c0_i32_9 : i32
    scf.if %11 {
      %c0_10 = arith.constant 0 : index
      %c0_11 = arith.constant 0 : index
      %12 = vector.load %arg8[%c0_10, %c0_11] : memref<512x128xf32, #tpu.memory_space<vmem>>, vector<512x128xf32>
      %c0_12 = arith.constant 0 : index
      %c0_13 = arith.constant 0 : index
      %13 = vector.load %arg5[%c0_12, %c0_13] : memref<1x128xf32, #tpu.memory_space<vmem>>, vector<1x128xf32>
      %14 = vector.broadcast %13 : vector<1x128xf32> to vector<512x128xf32>
      %15 = arith.mulf %12, %14 : vector<512x128xf32>
      %c0_14 = arith.constant 0 : index
      %c0_15 = arith.constant 0 : index
      %16 = vector.load %arg6[%c0_14, %c0_15] : memref<1x128xf32, #tpu.memory_space<vmem>>, vector<1x128xf32>
      %17 = vector.broadcast %16 : vector<1x128xf32> to vector<512x128xf32>
      %18 = arith.addf %15, %17 : vector<512x128xf32>
      %cst_16 = arith.constant 0.000000e+00 : f32
      %19 = vector.broadcast %cst_16 : f32 to vector<512x128xf32>
      %20 = arith.maximumf %18, %19 : vector<512x128xf32>
      %21 = arith.truncf %20 : vector<512x128xf32> to vector<512x128xbf16>
      %c0_17 = arith.constant 0 : index
      %c0_18 = arith.constant 0 : index
      %22 = vector.load %arg7[%c0_17, %c0_18] : memref<512x128xbf16, #tpu.memory_space<vmem>>, vector<512x128xbf16>
      tpu.vector_store %arg7[%c0_17, %c0_18], %21 {strides = array<i32>} : memref<512x128xbf16, #tpu.memory_space<vmem>>, vector<512x128xbf16>,
    } else {
    }
    return
  }
  func.func @transform_0(%arg0: i32, %arg1: i32, %arg2: i32) -> (i32, i32) {
    %c0_i32 = arith.constant 0 : i32
    return %arg0, %arg2 : i32, i32
  }
  func.func @transform_1(%arg0: i32, %arg1: i32, %arg2: i32) -> (i32, i32) {
    %c0_i32 = arith.constant 0 : i32
    return %arg2, %arg1 : i32, i32
  }
  func.func @transform_2(%arg0: i32, %arg1: i32, %arg2: i32) -> (i32, i32) {
    %c0_i32 = arith.constant 0 : i32
    %c0_i32_0 = arith.constant 0 : i32
    return %c0_i32, %arg1 : i32, i32
  }
  func.func @transform_3(%arg0: i32, %arg1: i32, %arg2: i32) -> (i32, i32) {
    %c0_i32 = arith.constant 0 : i32
    %c0_i32_0 = arith.constant 0 : i32
    return %c0_i32, %arg1 : i32, i32
  }
  func.func @transform_4(%arg0: i32, %arg1: i32, %arg2: i32) -> (i32, i32) {
    %c0_i32 = arith.constant 0 : i32
    return %arg0, %arg1 : i32, i32
  }
}

</mosaic_0001>

<bundles_post_ra>
// kernel: tpu_custom_call.1
= control target key start
LH: loop header
LB: loop body
LE: loop exit
PB: predicated region body
PF: predicated region fallthrough
CT: control target
= control target key end

     0   :  { %9 = vsyncpa [#allocation4], 0  ;;  %s3263_s0 = inlined_call_operand.vmem [shape: bf16[2048,147], index: 0, kind: input, shape index: {}]   ;;  %s3264_s1 = inlined_call_operand.vmem [shape: bf16[147,128], index: 1, kind: input, shape index: {}]   ;;  %s3265_s2 = inlined_call_operand.vmem [shape: f32[1,128], index: 2, kind: input, shape index: {}]   ;;  %s3266_s3 = inlined_call_operand.vmem [shape: f32[1,128], index: 3, kind: input, shape index: {}]   ;;  %s3267_s4 = inlined_call_operand.hbm [shape: bf16[2048,128], index: 4, kind: output, shape index: {}]  }
   0x1   :  { %11 = vsyncpa [#allocation4 + $0x1], 0  ;;  %s2753_s15 = smov 0   ;;  %s2755_s16 = smov 0  }
   0x2   :  { %s2757_s17 = smov 0   ;;  %s2759_s18 = smov 0  }
   0x3   :  { %s2761_s19 = smov 0   ;;  %s2763_s20 = smov 0  }
   0x4 LB: > { %s1966_s21 = sadd.s32 4294967295, %s2723_s20   ;;  %s1967_s22 = sadd.s32 4294967294, %s2723_s20   ;;  %s2723_s20 = sphi %s2763_s20, %s17_s20   ;;  %s2719_s19 = sphi %s2761_s19, %s3274_s19   ;;  %s2715_s18 = sphi %s2759_s18, %s3273_s18   ;;  %s2711_s17 = sphi %s2757_s17, %s3272_s17   ;;  %s2707_s16 = sphi %s2755_s16, %s3271_s16   ;;  %s2703_s15 = sphi %s2753_s15, %s3270_s15  }
   0x5   : > { %s36_s23 = sadd.s32 1, %s2719_s19  ;;  %s153_s24 = sadd.s32 1, %s2711_s17 }
   0x6   : > { %p38_p0 = scmp.ge.s32.totalorder %s36_s23, 4  ;;  %p163_p1 = scmp.ne.s32.totalorder %s2711_s17, %s2707_s16 }
   0x7   : > { %p164_p2 = scmp.eq.s32.totalorder %s1966_s21, 3  ;;  %p169_p3 = scmp.ne.s32.totalorder %s2707_s16, %s2703_s15 }
   0x8   : > { %s3276_s23 = smov (%p38_p0, %s36_s23), 0  ;;  %p170_p5 = scmp.eq.s32.totalorder %s1967_s22, 3 }
   0x9   : > { %p2793_p4 = por %p164_p2, %p163_p1  ;;  %s148_s26 = ssub.s32 %s2719_s19, %s3276_s23 }
   0xa   : > { %p1973_p6 = scmp.ge.s32.totalorder %s2723_s20, 1  ;;  %p151_p7 = scmp.eq.s32.totalorder %s148_s26, 0 }
   0xb   : > { %p2800_p8 = por %p170_p5, %p169_p3  ;;  %p227_p9 = scmp.lt.s32.totalorder %s2723_s20, 5 }
   0xc   : > { %s2806_s28 = scalar_select %p151_p7, %s2711_s17, %s153_s24  }
   0xd   : > { %p228_p10 = pnand %p1973_p6, %p227_p9 }
   0xe   : > { %s1975_s7 = sshll.u32 (!%p228_p10), %s2715_s18, 6  ;;  %s269_s22 = sand.u32 (!%p228_p10), 1, %s2707_s16  }
   0xf   : > { %231 = sbr.rel (%p228_p10) target bundleno = 446 (0x1be), region = 36  ;;  %p274_p11 = scmp.lt.s32.totalorder (!%p228_p10), %s1975_s7, 255 }
  0x10   : > { %s1974_s26 = sshll.u32 (!%p228_p10), %s269_s22, 8 }
  0x11   : > { %s2979_s29 = scalar_lea.vmem (!%p228_p10), [#allocation3], %s1974_s26 }
  0x12   : > { %s1840_s11 = sshll.u32 (!%p228_p10), %s2979_s29, 4  ;;  %s1841_s11 = int_to_ptr.vmem [resolvable:$true] %s1840_s11 }
  0x14   : > { %v2379_v0 = vld [vmem:[%s3264_s1 + $0x38] sm:$0xff]  ;;  %v515_v1 = vld [vmem:[%s3264_s1 + $0x48] sm:$0x3]  ;;  %vm958_vm0 = vcmask 1040384   ;;  %vm959_vm1 = vcmask 1041408   ;;  %v2378_v3 = vld [vmem:[%s3264_s1 + $0x30] sm:$0xff] }
  0x15   : > { %v841_v2 = vunpack.c.l.b16 %v515_v1  ;;  %965 = vmatpush.bf16.msra.mxu0 %v2379_v0  ;;  %2573 = vmatpush.bf16.msra.mxu2 %v2379_v0  ;;  %v2725_v4 = vmov 65535   ;;  %s3278_s7 = smov (!%p274_p11, %s1975_s7), 255  ;;  %v2377_v9 = vld [vmem:[%s3264_s1 + $0x28] sm:$0xff]  ;;  %v2380_v10 = vld [vmem:[%s3264_s1 + $0x40] sm:$0xff]  ;;  %vm861_vm2 = vcmask 154624   ;;  %v2375_v18 = vld [vmem:[%s3264_s1 + $0x18] sm:$0xff] }
  0x16   : > { %v960_v5 = vsel %vm958_vm0, 4294967295, %v2725_v4  ;;  %s2307_s12 = sshll.u32 %s3278_s7, 3  ;;  %v2376_v14 = vld [vmem:[%s3264_s1 + $0x20] sm:$0xff]  ;;  %v2374_v19 = vld [vmem:[%s3264_s1 + $0x10] sm:$0xff]  ;;  %v2373_v20 = vld [vmem:[%s3264_s1 + $0x8] sm:$0xff]  ;;  %s2381_s7 = sshll.u32 %s2715_s18, 8 }
  0x17   : > { %v851_v6 = vpack.c.b16 %v841_v2, %v841_v2  ;;  %v961_v7 = vsel %vm959_vm1, %v960_v5, 0  ;;  %s2827_s24 = scalar_lea.vmem %s3263_s0, %s2307_s12  ;;  %v2372_v26 = vld [vmem:[%s3264_s1] sm:$0xff]  ;;  %s1839_s10 = scalar_lea.hbm %s3267_s4, %s2381_s7 }
  0x18   : > { %v2308_v11 = vld [vmem:[%s2827_s24 + $0x4] sm:$0xf]  ;;  %v1982_v12 = vld [vmem:[%s2827_s24 + $0x8] sm:$0xf0]  ;;  %v2342_v15 = vld [vmem:[%s2827_s24 + $0x114] sm:$0xf] }
  0x19   : > { %v963_v8 = vand.u32 %v961_v7, %v851_v6  ;;  %966 = vmatpush.bf16.msra.mxu0 %v2378_v3  ;;  %2574 = vmatpush.bf16.msra.mxu2 %v2378_v3  ;;  %v1985_v13 = vor.u32 %v2308_v11, %v1982_v12  ;;  %v2118_v16 = vld [vmem:[%s2827_s24 + $0x118] sm:$0xf0]  ;;  %v2310_v21 = vld [vmem:[%s2827_s24 + $0x14] sm:$0xf]  ;;  %v2344_v23 = vld [vmem:[%s2827_s24 + $0x124] sm:$0xf] }
  0x1a   : > { %v2121_v17 = vor.u32 %v2342_v15, %v2118_v16  ;;  %v1990_v22 = vld [vmem:[%s2827_s24 + $0x18] sm:$0xf0]  ;;  %v2126_v24 = vld [vmem:[%s2827_s24 + $0x128] sm:$0xf0]  ;;  %v1980_v27 = vld [vmem:[%s2827_s24] sm:$0xf] }
  0x1b   : > { %1140 = vmatpush.bf16.msra.mxu1 %v963_v8  ;;  %2581 = vmatpush.bf16.msra.mxu3 %v963_v8  ;;  %v1993_v25 = vor.u32 %v2310_v21, %v1990_v22  ;;  %v2309_v28 = vld [vmem:[%s2827_s24 + $0x4] sm:$0xf0]  ;;  %v2108_v29 = vld [vmem:[%s2827_s24 + $0x100] sm:$0xf]  ;;  %v2129_v31 = vor.u32 %v2344_v23, %v2126_v24  ;;  %v2312_v34 = vld [vmem:[%s2827_s24 + $0x24] sm:$0xf] }
  0x1c   : > { %v2341_v30 = vld [vmem:[%s2827_s24 + $0x104] sm:$0xf0]  ;;  %v1981_v32 = vor.u32 %v2309_v28, %v1980_v27  ;;  %v1998_v35 = vld [vmem:[%s2827_s24 + $0x28] sm:$0xf0]  ;;  %v2346_v36 = vld [vmem:[%s2827_s24 + $0x134] sm:$0xf] }
  0x1d   : > { %967 = vmatpush.bf16.msra.mxu0 %v2377_v9  ;;  %2575 = vmatpush.bf16.msra.mxu2 %v2377_v9  ;;  %v2109_v33 = vor.u32 %v2341_v30, %v2108_v29  ;;  %v2134_v37 = vld [vmem:[%s2827_s24 + $0x138] sm:$0xf0]  ;;  %v2001_v38 = vor.u32 %v2312_v34, %v1998_v35  ;;  %v1988_v39 = vld [vmem:[%s2827_s24 + $0x10] sm:$0xf]  ;;  %v2311_v40 = vld [vmem:[%s2827_s24 + $0x14] sm:$0xf0] }
  0x1e   : > { %v2116_v41 = vld [vmem:[%s2827_s24 + $0x110] sm:$0xf]  ;;  %v2343_v42 = vld [vmem:[%s2827_s24 + $0x114] sm:$0xf0]  ;;  %v2137_v43 = vor.u32 %v2346_v36, %v2134_v37  ;;  %v1989_v44 = vor.u32 %v2311_v40, %v1988_v39  ;;  %v2314_v46 = vld [vmem:[%s2827_s24 + $0x34] sm:$0xf] }
  0x1f   : > { %1141 = vmatpush.bf16.msra.mxu1 %v2380_v10  ;;  %2582 = vmatpush.bf16.msra.mxu3 %v2380_v10  ;;  %v2117_v45 = vor.u32 %v2343_v42, %v2116_v41  ;;  %v2006_v47 = vld [vmem:[%s2827_s24 + $0x38] sm:$0xf0]  ;;  %v2348_v48 = vld [vmem:[%s2827_s24 + $0x144] sm:$0xf]  ;;  %v2142_v49 = vld [vmem:[%s2827_s24 + $0x148] sm:$0xf0] }
  0x20   : > { %v2009_v50 = vor.u32 %v2314_v46, %v2006_v47  ;;  %v1996_v51 = vld [vmem:[%s2827_s24 + $0x20] sm:$0xf]  ;;  %v2313_v52 = vld [vmem:[%s2827_s24 + $0x24] sm:$0xf0]  ;;  %v2145_v55 = vor.u32 %v2348_v48, %v2142_v49  ;;  %v2316_v58 = vld [vmem:[%s2827_s24 + $0x44] sm:$0xf] }
  0x21   : > { %968 = vmatpush.bf16.msra.mxu0 %v2376_v14  ;;  %2576 = vmatpush.bf16.msra.mxu2 %v2376_v14  ;;  %v2124_v53 = vld [vmem:[%s2827_s24 + $0x120] sm:$0xf]  ;;  %v2345_v54 = vld [vmem:[%s2827_s24 + $0x124] sm:$0xf0]  ;;  %v1997_v56 = vor.u32 %v2313_v52, %v1996_v51  ;;  %v2014_v59 = vld [vmem:[%s2827_s24 + $0x48] sm:$0xf0] }
  0x22   : > { %2270 = vmatmul.msk.bf16.vlgmr.msra.gmra.mxu1 %vm861_vm2, %v1985_v13  ;;  %2287 = vmatmul.msk.bf16.vlgmr.msra.gmra.mxu3 %vm861_vm2, %v2121_v17  ;;  %v2125_v57 = vor.u32 %v2345_v54, %v2124_v53  ;;  %v2350_v60 = vld [vmem:[%s2827_s24 + $0x154] sm:$0xf]  ;;  %v2150_v61 = vld [vmem:[%s2827_s24 + $0x158] sm:$0xf0]  ;;  %v2017_v62 = vor.u32 %v2316_v58, %v2014_v59  ;;  %v2004_v63 = vld [vmem:[%s2827_s24 + $0x30] sm:$0xf] }
  0x23   : > { %v2315_v0 = vld [vmem:[%s2827_s24 + $0x34] sm:$0xf0]  ;;  %v2132_v1 = vld [vmem:[%s2827_s24 + $0x130] sm:$0xf]  ;;  %v2153_v3 = vor.u32 %v2350_v60, %v2150_v61  ;;  %v2318_v6 = vld [vmem:[%s2827_s24 + $0x54] sm:$0xf] }
  0x24   : > { %v2347_v2 = vld [vmem:[%s2827_s24 + $0x134] sm:$0xf0]  ;;  %v2005_v4 = vor.u32 %v2315_v0, %v2004_v63  ;;  %v2022_v7 = vld [vmem:[%s2827_s24 + $0x58] sm:$0xf0]  ;;  %v2352_v8 = vld [vmem:[%s2827_s24 + $0x164] sm:$0xf] }
  0x25   : > { %969 = vmatpush.bf16.msra.mxu0 %v2375_v18  ;;  %2577 = vmatpush.bf16.msra.mxu2 %v2375_v18  ;;  %v2133_v5 = vor.u32 %v2347_v2, %v2132_v1  ;;  %v2158_v9 = vld [vmem:[%s2827_s24 + $0x168] sm:$0xf0]  ;;  %v2025_v10 = vor.u32 %v2318_v6, %v2022_v7  ;;  %v2012_v11 = vld [vmem:[%s2827_s24 + $0x40] sm:$0xf]  ;;  %v2317_v12 = vld [vmem:[%s2827_s24 + $0x44] sm:$0xf0] }
  0x26   : > { %v2140_v13 = vld [vmem:[%s2827_s24 + $0x140] sm:$0xf]  ;;  %v2349_v14 = vld [vmem:[%s2827_s24 + $0x144] sm:$0xf0]  ;;  %v2161_v15 = vor.u32 %v2352_v8, %v2158_v9  ;;  %v2013_v16 = vor.u32 %v2317_v12, %v2012_v11  ;;  %v2320_v18 = vld [vmem:[%s2827_s24 + $0x64] sm:$0xf] }
  0x27   : > { %v2141_v17 = vor.u32 %v2349_v14, %v2140_v13  ;;  %v2166_v21 = vld [vmem:[%s2827_s24 + $0x178] sm:$0xf0]  ;;  %v2020_v23 = vld [vmem:[%s2827_s24 + $0x50] sm:$0xf]  ;;  %v2319_v24 = vld [vmem:[%s2827_s24 + $0x54] sm:$0xf0] }
  0x28   : > { %v2021_v28 = vor.u32 %v2319_v24, %v2020_v23  ;;  %v2322_v30 = vld [vmem:[%s2827_s24 + $0x74] sm:$0xf]  ;;  %v2028_v35 = vld [vmem:[%s2827_s24 + $0x60] sm:$0xf]  ;;  %v2321_v36 = vld [vmem:[%s2827_s24 + $0x64] sm:$0xf0] }
  0x29   : > { %970 = vmatpush.bf16.msra.mxu0 %v2374_v19  ;;  %2578 = vmatpush.bf16.msra.mxu2 %v2374_v19  ;;  %v2030_v19 = vld [vmem:[%s2827_s24 + $0x68] sm:$0xf0]  ;;  %v2156_v37 = vld [vmem:[%s2827_s24 + $0x160] sm:$0xf]  ;;  %v2029_v40 = vor.u32 %v2321_v36, %v2028_v35  ;;  %v2324_v42 = vld [vmem:[%s2827_s24 + $0x84] sm:$0xf] }
  0x2a   : > { %v2033_v22 = vor.u32 %v2320_v18, %v2030_v19  ;;  %v2036_v47 = vld [vmem:[%s2827_s24 + $0x70] sm:$0xf]  ;;  %v2323_v48 = vld [vmem:[%s2827_s24 + $0x74] sm:$0xf0]  ;;  %v2054_v58 = vld [vmem:[%s2827_s24 + $0x98] sm:$0xf0] }
  0x2b   : > { %v2355_v51 = vld [vmem:[%s2827_s24 + $0x174] sm:$0xf0]  ;;  %v2037_v53 = vor.u32 %v2323_v48, %v2036_v47  ;;  %v2360_v59 = vld [vmem:[%s2827_s24 + $0x1a4] sm:$0xf]  ;;  %v2190_v60 = vld [vmem:[%s2827_s24 + $0x1a8] sm:$0xf0] }
  0x2c   : > { %v2325_v63 = vld [vmem:[%s2827_s24 + $0x84] sm:$0xf0]  ;;  %v2172_v2 = vld [vmem:[%s2827_s24 + $0x180] sm:$0xf]  ;;  %v2062_v18 = vld [vmem:[%s2827_s24 + $0xa8] sm:$0xf0] }
  0x2d   : > { %971 = vmatpush.bf16.msra.mxu0 %v2373_v20  ;;  %2579 = vmatpush.bf16.msra.mxu2 %v2373_v20  ;;  %v2354_v20 = vld [vmem:[%s2827_s24 + $0x174] sm:$0xf]  ;;  %v2947_v9 = vld [vmem:[%s3265_s2] ss:$0 sm:$0xff]  ;;  %v2052_v24 = vld [vmem:[%s2827_s24 + $0x90] sm:$0xf] }
  0x2e   : > { %v2169_v27 = vor.u32 %v2354_v20, %v2166_v21  ;;  %v2955_v13 = vld [vmem:[%s3266_s3] ss:$0 sm:$0xff]  ;;  %v2362_v19 = vld [vmem:[%s2827_s24 + $0x1b4] sm:$0xf]  ;;  %v2198_v20 = vld [vmem:[%s2827_s24 + $0x1b8] sm:$0xf0] }
  0x2f   : > { %v2070_v47 = vld [vmem:[%s2827_s24 + $0xb8] sm:$0xf0]  ;;  %s1842_s18 = sshll.u32 %s1839_s10, 4  ;;  %s1827_s12 = scalar_lea.sflag [#allocation4], %s269_s22  ;;  %s1843_s18 = int_to_ptr.hbm [resolvable:$true] %s1842_s18 }
  0x30   : > { %s2659_s13 = sshra.s32 %s1843_s18, 4  ;;  %s2660_s13 = int_to_ptr.hbm [resolvable:$true] %s2659_s13 }
  0x31   : > { %972 = vmatpush.bf16.msra.mxu0 %v2372_v26  ;;  %2580 = vmatpush.bf16.msra.mxu2 %v2372_v26  ;;  %v2351_v26 = vld [vmem:[%s2827_s24 + $0x154] sm:$0xf0]  ;;  %s2661_s14 = scalar_lea.hbm %s2660_s13, 256  ;;  %p2666_p1 = scmp.lt.s32.totalorder %s2660_s13, %s3267_s4 }
  0x32   : > { %2271 = vmatmul.msk.bf16.gmra.mxu1 %vm861_vm2, %v1993_v25  ;;  %2288 = vmatmul.msk.bf16.gmra.mxu3 %vm861_vm2, %v2129_v31  ;;  %v2148_v25 = vld [vmem:[%s2827_s24 + $0x150] sm:$0xf]  ;;  %v2038_v31 = vld [vmem:[%s2827_s24 + $0x78] sm:$0xf0]  ;;  %p2662_p12 = scmp.ne.s32.totalorder %s2660_s13, %s2661_s14 }
  0x33   : > { %v2149_v29 = vor.u32 %v2351_v26, %v2148_v25  ;;  %v2041_v34 = vor.u32 %v2322_v30, %v2038_v31  ;;  %v2327_v25 = vld [vmem:[%s2827_s24 + $0x94] sm:$0xf0]  ;;  %v2201_v31 = vor.u32 %v2362_v19, %v2198_v20 }
  0x34   : > { %973 = vmatmul.bf16.vlgmr.msra.gmra.mxu0 %v1981_v32  ;;  %1053 = vmatmul.bf16.vlgmr.msra.gmra.mxu2 %v2109_v33  ;;  %v2356_v32 = vld [vmem:[%s2827_s24 + $0x184] sm:$0xf]  ;;  %v2174_v33 = vld [vmem:[%s2827_s24 + $0x188] sm:$0xf0]  ;;  %v2359_v30 = vld [vmem:[%s2827_s24 + $0x194] sm:$0xf0]  ;;  %v2053_v35 = vor.u32 %v2327_v25, %v2052_v24  ;;  %p2663_p13 = pnand %p2662_p12, %p2793_p4 }
  0x35   : > { %v2177_v39 = vor.u32 %v2356_v32, %v2174_v33  ;;  %v2332_v24 = vld [vmem:[%s2827_s24 + $0xc4] sm:$0xf]  ;;  %v2078_v25 = vld [vmem:[%s2827_s24 + $0xc8] sm:$0xf0] }
  0x36   : > { %p2664_p0 = pneg %p2663_p13 }
  0x42   : > { %2272 = vmatmul.msk.bf16.gmra.mxu1 %vm861_vm2, %v2001_v38  ;;  %2289 = vmatmul.msk.bf16.gmra.mxu3 %vm861_vm2, %v2137_v43  ;;  %v2353_v38 = vld [vmem:[%s2827_s24 + $0x164] sm:$0xf0]  ;;  %v2046_v43 = vld [vmem:[%s2827_s24 + $0x88] sm:$0xf0] }
  0x43   : > { %v2157_v41 = vor.u32 %v2353_v38, %v2156_v37  ;;  %v2049_v46 = vor.u32 %v2324_v42, %v2046_v43 }
  0x44   : > { %978 = vmatmul.bf16.gmra.mxu0 %v1989_v44  ;;  %1058 = vmatmul.bf16.gmra.mxu2 %v2117_v45  ;;  %v2358_v44 = vld [vmem:[%s2827_s24 + $0x194] sm:$0xf]  ;;  %v2182_v45 = vld [vmem:[%s2827_s24 + $0x198] sm:$0xf0] }
  0x45   : > { %v2185_v52 = vor.u32 %v2358_v44, %v2182_v45 }
  0x52   : > { %2273 = vmatmul.msk.bf16.gmra.mxu1 %vm861_vm2, %v2009_v50  ;;  %2290 = vmatmul.msk.bf16.gmra.mxu3 %vm861_vm2, %v2145_v55  ;;  %v2164_v50 = vld [vmem:[%s2827_s24 + $0x170] sm:$0xf] }
  0x53   : > { %v2165_v54 = vor.u32 %v2355_v51, %v2164_v50  ;;  %v2206_v50 = vld [vmem:[%s2827_s24 + $0x1c8] sm:$0xf0] }
  0x54   : > { %983 = vmatmul.bf16.gmra.mxu0 %v1997_v56  ;;  %1063 = vmatmul.bf16.gmra.mxu2 %v2125_v57  ;;  %v2326_v57 = vld [vmem:[%s2827_s24 + $0x94] sm:$0xf] }
  0x55   : > { %v2057_v61 = vor.u32 %v2326_v57, %v2054_v58 }
  0x62   : > { %2274 = vmatmul.msk.bf16.gmra.mxu1 %vm861_vm2, %v2017_v62  ;;  %2291 = vmatmul.msk.bf16.gmra.mxu3 %vm861_vm2, %v2153_v3  ;;  %v2044_v62 = vld [vmem:[%s2827_s24 + $0x80] sm:$0xf]  ;;  %v2357_v3 = vld [vmem:[%s2827_s24 + $0x184] sm:$0xf0] }
  0x63   : > { %v2173_v7 = vor.u32 %v2357_v3, %v2172_v2 }
  0x64   : > { %988 = vmatmul.bf16.gmra.mxu0 %v2005_v4  ;;  %1068 = vmatmul.bf16.gmra.mxu2 %v2133_v5  ;;  %v2193_v4 = vor.u32 %v2360_v59, %v2190_v60  ;;  %v2045_v5 = vor.u32 %v2325_v63, %v2044_v62  ;;  %v2188_v60 = vld [vmem:[%s2827_s24 + $0x1a0] sm:$0xf] }
  0x72   : > { %2275 = vmatmul.msk.bf16.gmra.mxu1 %vm861_vm2, %v2025_v10  ;;  %2292 = vmatmul.msk.bf16.gmra.mxu3 %vm861_vm2, %v2161_v15 }
  0x74   : > { %993 = vmatmul.bf16.gmra.mxu0 %v2013_v16  ;;  %1073 = vmatmul.bf16.gmra.mxu2 %v2141_v17  ;;  %v2328_v17 = vld [vmem:[%s2827_s24 + $0xa4] sm:$0xf] }
  0x75   : > { %v2065_v23 = vor.u32 %v2328_v17, %v2062_v18 }
  0x82   : > { %2276 = vmatmul.msk.bf16.gmra.mxu1 %vm861_vm2, %v2033_v22  ;;  %2293 = vmatmul.msk.bf16.gmra.mxu3 %vm861_vm2, %v2169_v27 }
  0x84   : > { %998 = vmatmul.bf16.gmra.mxu0 %v2021_v28  ;;  %1078 = vmatmul.bf16.gmra.mxu2 %v2149_v29  ;;  %v2180_v29 = vld [vmem:[%s2827_s24 + $0x190] sm:$0xf] }
  0x85   : > { %v2181_v37 = vor.u32 %v2359_v30, %v2180_v29  ;;  %v2214_v29 = vld [vmem:[%s2827_s24 + $0x1d8] sm:$0xf0] }
  0x92   : > { %2277 = vmatmul.msk.bf16.gmra.mxu1 %vm861_vm2, %v2041_v34  ;;  %2294 = vmatmul.msk.bf16.gmra.mxu3 %vm861_vm2, %v2177_v39 }
  0x94   : > { %1003 = vmatmul.bf16.gmra.mxu0 %v2029_v40  ;;  %1083 = vmatmul.bf16.gmra.mxu2 %v2157_v41 }
  0x9f   : > { %v1143_v49 = vpop.f32.mrf.mxu1 }
  0xa2   : > { %2278 = vmatmul.msk.bf16.gmra.mxu1 %vm861_vm2, %v2049_v46  ;;  %2295 = vmatmul.msk.bf16.gmra.mxu3 %vm861_vm2, %v2185_v52  ;;  %v2330_v46 = vld [vmem:[%s2827_s24 + $0xb4] sm:$0xf] }
  0xa4   : > { %1008 = vmatmul.bf16.gmra.mxu0 %v2037_v53  ;;  %1088 = vmatmul.bf16.gmra.mxu2 %v2165_v54  ;;  %v2073_v53 = vor.u32 %v2330_v46, %v2070_v47  ;;  %v2060_v54 = vld [vmem:[%s2827_s24 + $0xa0] sm:$0xf] }
  0xa5   : > { %v2930_v55 = vpop.f32.mrf.mxu3 }
  0xa7   : > { %v1145_v56 = vpop.f32.mrf.mxu1 }
  0xad   : > { %v2938_v0 = vpop.f32.mrf.mxu3 }
  0xaf   : > { %v1148_v1 = vpop.f32.mrf.mxu1 }
  0xb1   : > { %v974_v6 = vpop.f32.mrf.mxu0 }
  0xb2   : > { %2279 = vmatmul.msk.bf16.gmra.mxu1 %vm861_vm2, %v2057_v61  ;;  %2296 = vmatmul.msk.bf16.gmra.mxu3 %vm861_vm2, %v2193_v4  ;;  %v1144_v8 = vadd.f32 %v1143_v49, %v974_v6  ;;  %v2364_v49 = vld [vmem:[%s2827_s24 + $0x1c4] sm:$0xf]  ;;  %v2361_v61 = vld [vmem:[%s2827_s24 + $0x1a4] sm:$0xf0] }
  0xb3   : > { %v2209_v62 = vor.u32 %v2364_v49, %v2206_v50  ;;  %v2189_v6 = vor.u32 %v2361_v61, %v2188_v60 }
  0xb4   : > { %1013 = vmatmul.bf16.gmra.mxu0 %v2045_v5  ;;  %1093 = vmatmul.bf16.gmra.mxu2 %v2173_v7  ;;  %v1502_v12 = vmul.f32 %v2947_v9, %v1144_v8 }
  0xb5   : > { %v2949_v10 = vpop.f32.mrf.mxu3 }
  0xb6   : > { %v1570_v21 = vadd.f32 %v2955_v13, %v1502_v12 }
  0xb7   : > { %v1150_v11 = vpop.f32.mrf.mxu1  ;;  %v2957_v14 = vpop.f32.mrf.mxu2 }
  0xb8   : > { %v1634_v32 = vmax.f32 %v1570_v21, 0.0 }
  0xb9   : > { %v976_v15 = vpop.f32.mrf.mxu0 }
  0xba   : > { %v1146_v16 = vadd.f32 %v1145_v56, %v976_v15  ;;  %v2329_v56 = vld [vmem:[%s2827_s24 + $0xa4] sm:$0xf0] }
  0xbb   : > { %v2061_v3 = vor.u32 %v2329_v56, %v2060_v54 }
  0xbc   : > { %v1503_v22 = vmul.f32 %v2947_v9, %v1146_v16 }
  0xbd   : > { %v2968_v26 = vpop.f32.mrf.mxu3 }
  0xbe   : > { %v1571_v27 = vadd.f32 %v2955_v13, %v1503_v22 }
  0xbf   : > { %v1153_v28 = vpop.f32.mrf.mxu1  ;;  %v2975_v34 = vpop.f32.mrf.mxu2 }
  0xc0   : > { %v1635_v33 = vmax.f32 %v1571_v27, 0.0 }
  0xc1   : > { %v979_v36 = vpop.f32.mrf.mxu0 }
  0xc2   : > { %2280 = vmatmul.msk.bf16.gmra.mxu1 %vm861_vm2, %v2065_v23  ;;  %v2385_v38 = vpack.c.bf16 %v1635_v33, %v1634_v32  ;;  %2297 = vmatmul.msk.bf16.gmra.mxu3 %vm861_vm2, %v2201_v31  ;;  %v1149_v39 = vadd.f32 %v1148_v1, %v979_v36  ;;  %v2081_v32 = vor.u32 %v2332_v24, %v2078_v25  ;;  %v2068_v33 = vld [vmem:[%s2827_s24 + $0xb0] sm:$0xf] }
  0xc4   : > { %2386 = vst [vmem:[%s2979_s29] sm:$0xff] %v2385_v38   ;;  %1018 = vmatmul.bf16.gmra.mxu0 %v2053_v35  ;;  %1098 = vmatmul.bf16.gmra.mxu2 %v2181_v37  ;;  %v1504_v42 = vmul.f32 %v2947_v9, %v1149_v39  ;;  %v2331_v35 = vld [vmem:[%s2827_s24 + $0xb4] sm:$0xf0]  ;;  %v2196_v39 = vld [vmem:[%s2827_s24 + $0x1b0] sm:$0xf] }
  0xc5   : > { %v2982_v40 = vpop.f32.mrf.mxu3  ;;  %v2069_v46 = vor.u32 %v2331_v35, %v2068_v33 }
  0xc6   : > { %v1572_v51 = vadd.f32 %v2955_v13, %v1504_v42 }
  0xc7   : > { %v1155_v41 = vpop.f32.mrf.mxu1  ;;  %v1059_v43 = vpop.f32.mrf.mxu2 }
  0xc8   : > { %v1229_v48 = vadd.f32 %v2930_v55, %v1059_v43  ;;  %v1636_v63 = vmax.f32 %v1572_v51, 0.0 }
  0xc9   : > { %v981_v44 = vpop.f32.mrf.mxu0 }
  0xca   : > { %v1151_v45 = vadd.f32 %v1150_v11, %v981_v44  ;;  %v1536_v55 = vmul.f32 %v2947_v9, %v1229_v48 }
  0xcc   : > { %v1505_v52 = vmul.f32 %v2947_v9, %v1151_v45  ;;  %v1604_v8 = vadd.f32 %v2955_v13, %v1536_v55 }
  0xcd   : > { %v2994_v57 = vpop.f32.mrf.mxu3 }
  0xce   : > { %v1573_v58 = vadd.f32 %v2955_v13, %v1505_v52  ;;  %v1668_v17 = vmax.f32 %v1604_v8, 0.0 }
  0xcf   : > { %v1158_v59 = vpop.f32.mrf.mxu1  ;;  %v1061_v2 = vpop.f32.mrf.mxu2 }
  0xd0   : > { %v1637_v1 = vmax.f32 %v1573_v58, 0.0  ;;  %v1231_v4 = vadd.f32 %v2938_v0, %v1061_v2  ;;  %v2086_v2 = vld [vmem:[%s2827_s24 + $0xd8] sm:$0xf0] }
  0xd1   : > { %v984_v5 = vpop.f32.mrf.mxu0 }
  0xd2   : > { %2281 = vmatmul.msk.bf16.gmra.mxu1 %vm861_vm2, %v2073_v53  ;;  %v2390_v7 = vpack.c.bf16 %v1637_v1, %v1636_v63  ;;  %2298 = vmatmul.msk.bf16.gmra.mxu3 %vm861_vm2, %v2209_v62  ;;  %v1537_v11 = vmul.f32 %v2947_v9, %v1231_v4  ;;  %v1154_v12 = vadd.f32 %v1153_v28, %v984_v5  ;;  %v2366_v28 = vld [vmem:[%s2827_s24 + $0x1d4] sm:$0xf]  ;;  %v2368_v4 = vld [vmem:[%s2827_s24 + $0x1e4] sm:$0xf]  ;;  %v2222_v5 = vld [vmem:[%s2827_s24 + $0x1e8] sm:$0xf0] }
  0xd3   : > { %v2217_v42 = vor.u32 %v2366_v28, %v2214_v29  ;;  %v2334_v1 = vld [vmem:[%s2827_s24 + $0xd4] sm:$0xf] }
  0xd4   : > { %2542 = vst [vmem:[%s2979_s29 + $0x8] sm:$0xff] %v2390_v7   ;;  %1023 = vmatmul.bf16.gmra.mxu0 %v2061_v3  ;;  %v1605_v0 = vadd.f32 %v2955_v13, %v1537_v11  ;;  %1103 = vmatmul.bf16.gmra.mxu2 %v2189_v6  ;;  %v1506_v19 = vmul.f32 %v2947_v9, %v1154_v12  ;;  %v2076_v11 = vld [vmem:[%s2827_s24 + $0xc0] sm:$0xf]  ;;  %v2333_v12 = vld [vmem:[%s2827_s24 + $0xc4] sm:$0xf0] }
  0xd5   : > { %v3007_v15 = vpop.f32.mrf.mxu3  ;;  %v2089_v8 = vor.u32 %v2334_v1, %v2086_v2  ;;  %v2077_v24 = vor.u32 %v2333_v12, %v2076_v11 }
  0xd6   : > { %v1669_v18 = vmax.f32 %v1605_v0, 0.0  ;;  %v1574_v30 = vadd.f32 %v2955_v13, %v1506_v19  ;;  %v2365_v19 = vld [vmem:[%s2827_s24 + $0x1c4] sm:$0xf0] }
  0xd7   : > { %v1160_v16 = vpop.f32.mrf.mxu1  ;;  %v1064_v20 = vpop.f32.mrf.mxu2 }
  0xd8   : > { %v2470_v21 = vpack.c.bf16 %v1669_v18, %v1668_v17  ;;  %v1234_v27 = vadd.f32 %v2949_v10, %v1064_v20  ;;  %v1638_v43 = vmax.f32 %v1574_v30, 0.0  ;;  %v2204_v18 = vld [vmem:[%s2827_s24 + $0x1c0] sm:$0xf]  ;;  %v2225_v20 = vor.u32 %v2368_v4, %v2222_v5 }
  0xd9   : > { %v986_v22 = vpop.f32.mrf.mxu0  ;;  %v2205_v28 = vor.u32 %v2365_v19, %v2204_v18 }
  0xda   : > { %v1156_v23 = vadd.f32 %v1155_v41, %v986_v22  ;;  %2558 = vst [vmem:[%s2979_s29 + $0x88] sm:$0xff] %v2470_v21   ;;  %v2363_v41 = vld [vmem:[%s2827_s24 + $0x1b4] sm:$0xf0]  ;;  %v1538_v10 = vmul.f32 %v2947_v9, %v1234_v27 }
  0xdb   : > { %v2197_v49 = vor.u32 %v2363_v41, %v2196_v39 }
  0xdc   : > { %v1507_v31 = vmul.f32 %v2947_v9, %v1156_v23  ;;  %v1606_v51 = vadd.f32 %v2955_v13, %v1538_v10 }
  0xdd   : > { %v3020_v36 = vpop.f32.mrf.mxu3 }
  0xde   : > { %v1575_v37 = vadd.f32 %v2955_v13, %v1507_v31  ;;  %v1670_v58 = vmax.f32 %v1606_v51, 0.0 }
  0xdf   : > { %v1163_v38 = vpop.f32.mrf.mxu1  ;;  %v1066_v45 = vpop.f32.mrf.mxu2 }
  0xe0   : > { %v1639_v44 = vmax.f32 %v1575_v37, 0.0  ;;  %v1236_v47 = vadd.f32 %v2968_v26, %v1066_v45  ;;  %v2094_v45 = vld [vmem:[%s2827_s24 + $0xe8] sm:$0xf0] }
  0xe1   : > { %v989_v48 = vpop.f32.mrf.mxu0 }
  0xe2   : > { %2282 = vmatmul.msk.bf16.gmra.mxu1 %vm861_vm2, %v2081_v32  ;;  %v2395_v50 = vpack.c.bf16 %v1639_v44, %v1638_v43  ;;  %2299 = vmatmul.msk.bf16.gmra.mxu3 %vm861_vm2, %v2217_v42  ;;  %v1539_v52 = vmul.f32 %v2947_v9, %v1236_v47  ;;  %v1159_v53 = vadd.f32 %v1158_v59, %v989_v48  ;;  %v2336_v44 = vld [vmem:[%s2827_s24 + $0xe4] sm:$0xf]  ;;  %v2370_v47 = vld [vmem:[%s2827_s24 + $0x1f4] sm:$0xf]  ;;  %v2230_v48 = vld [vmem:[%s2827_s24 + $0x1f8] sm:$0xf0] }
  0xe3   : > { %v2097_v51 = vor.u32 %v2336_v44, %v2094_v45 }
  0xe4   : > { %2543 = vst [vmem:[%s2979_s29 + $0x10] sm:$0xff] %v2395_v50   ;;  %1028 = vmatmul.bf16.gmra.mxu0 %v2069_v46  ;;  %v1607_v26 = vadd.f32 %v2955_v13, %v1539_v52  ;;  %1108 = vmatmul.bf16.gmra.mxu2 %v2197_v49  ;;  %v1508_v61 = vmul.f32 %v2947_v9, %v1159_v53  ;;  %v2084_v52 = vld [vmem:[%s2827_s24 + $0xd0] sm:$0xf]  ;;  %v2335_v53 = vld [vmem:[%s2827_s24 + $0xd4] sm:$0xf0] }
  0xe5   : > { %v3033_v54 = vpop.f32.mrf.mxu3  ;;  %v2085_v1 = vor.u32 %v2335_v53, %v2084_v52 }
  0xe6   : > { %v1671_v60 = vmax.f32 %v1607_v26, 0.0  ;;  %v1576_v6 = vadd.f32 %v2955_v13, %v1508_v61  ;;  %v2367_v61 = vld [vmem:[%s2827_s24 + $0x1d4] sm:$0xf0] }
  0xe7   : > { %v1165_v56 = vpop.f32.mrf.mxu1  ;;  %v1069_v62 = vpop.f32.mrf.mxu2 }
  0xe8   : > { %v2475_v55 = vpack.c.bf16 %v1671_v60, %v1670_v58  ;;  %v1239_v3 = vadd.f32 %v2982_v40, %v1069_v62  ;;  %v1640_v21 = vmax.f32 %v1576_v6, 0.0  ;;  %v2212_v60 = vld [vmem:[%s2827_s24 + $0x1d0] sm:$0xf]  ;;  %v2233_v62 = vor.u32 %v2370_v47, %v2230_v48 }
  0xe9   : > { %v991_v63 = vpop.f32.mrf.mxu0  ;;  %v2213_v4 = vor.u32 %v2367_v61, %v2212_v60 }
  0xea   : > { %v1161_v59 = vadd.f32 %v1160_v16, %v991_v63  ;;  %2559 = vst [vmem:[%s2979_s29 + $0x90] sm:$0xff] %v2475_v55   ;;  %v1540_v40 = vmul.f32 %v2947_v9, %v1239_v3 }
  0xec   : > { %v1509_v7 = vmul.f32 %v2947_v9, %v1161_v59  ;;  %v1608_v30 = vadd.f32 %v2955_v13, %v1540_v40 }
  0xed   : > { %v3046_v0 = vpop.f32.mrf.mxu3 }
  0xee   : > { %v1577_v17 = vadd.f32 %v2955_v13, %v1509_v7  ;;  %v1672_v37 = vmax.f32 %v1608_v30, 0.0  ;;  %v2337_v30 = vld [vmem:[%s2827_s24 + $0xe4] sm:$0xf0] }
  0xef   : > { %v1168_v16 = vpop.f32.mrf.mxu1  ;;  %v1071_v23 = vpop.f32.mrf.mxu2 }
  0xf0   : > { %v1641_v22 = vmax.f32 %v1577_v17, 0.0  ;;  %v1241_v25 = vadd.f32 %v2994_v57, %v1071_v23  ;;  %v2102_v23 = vld [vmem:[%s2827_s24 + $0xf8] sm:$0xf0] }
  0xf1   : > { %v994_v27 = vpop.f32.mrf.mxu0 }
  0xf2   : > { %2283 = vmatmul.msk.bf16.gmra.mxu1 %vm861_vm2, %v2089_v8  ;;  %v2400_v29 = vpack.c.bf16 %v1641_v22, %v1640_v21  ;;  %2300 = vmatmul.msk.bf16.gmra.mxu3 %vm861_vm2, %v2225_v20  ;;  %v1541_v31 = vmul.f32 %v2947_v9, %v1241_v25  ;;  %v1164_v32 = vadd.f32 %v1163_v38, %v994_v27 }
  0xf4   : > { %2544 = vst [vmem:[%s2979_s29 + $0x18] sm:$0xff] %v2400_v29   ;;  %1033 = vmatmul.bf16.gmra.mxu0 %v2077_v24  ;;  %v1609_v57 = vadd.f32 %v2955_v13, %v1541_v31  ;;  %1113 = vmatmul.bf16.gmra.mxu2 %v2205_v28  ;;  %v1510_v41 = vmul.f32 %v2947_v9, %v1164_v32  ;;  %v2092_v29 = vld [vmem:[%s2827_s24 + $0xe0] sm:$0xf] }
  0xf5   : > { %v3059_v33 = vpop.f32.mrf.mxu3 }
  0xf6   : > { %v1673_v39 = vmax.f32 %v1609_v57, 0.0  ;;  %v1578_v49 = vadd.f32 %v2955_v13, %v1510_v41  ;;  %v2220_v57 = vld [vmem:[%s2827_s24 + $0x1e0] sm:$0xf] }
  0xf7   : > { %v1170_v35 = vpop.f32.mrf.mxu1  ;;  %v1074_v42 = vpop.f32.mrf.mxu2 }
  0xf8   : > { %v2480_v10 = vpack.c.bf16 %v1673_v39, %v1672_v37  ;;  %v1244_v46 = vadd.f32 %v3007_v15, %v1074_v42  ;;  %v1642_v55 = vmax.f32 %v1578_v49, 0.0  ;;  %v2369_v37 = vld [vmem:[%s2827_s24 + $0x1e4] sm:$0xf0] }
  0xf9   : > { %v996_v43 = vpop.f32.mrf.mxu0  ;;  %v2221_v44 = vor.u32 %v2369_v37, %v2220_v57 }
  0xfa   : > { %v1166_v38 = vadd.f32 %v1165_v56, %v996_v43  ;;  %2560 = vst [vmem:[%s2979_s29 + $0x98] sm:$0xff] %v2480_v10   ;;  %v1542_v15 = vmul.f32 %v2947_v9, %v1244_v46  ;;  %v2093_v10 = vor.u32 %v2337_v30, %v2092_v29 }
  0xfc   : > { %v1511_v50 = vmul.f32 %v2947_v9, %v1166_v38  ;;  %v1610_v6 = vadd.f32 %v2955_v13, %v1542_v15  ;;  %v2110_v15 = vld [vmem:[%s2827_s24 + $0x108] sm:$0xf0] }
  0xfd   : > { %v3072_v26 = vpop.f32.mrf.mxu3 }
  0xfe   : > { %v1579_v58 = vadd.f32 %v2955_v13, %v1511_v50  ;;  %v1674_v17 = vmax.f32 %v1610_v6, 0.0  ;;  %v2228_v6 = vld [vmem:[%s2827_s24 + $0x1f0] sm:$0xf] }
  0xff   : > { %v1173_v56 = vpop.f32.mrf.mxu1  ;;  %v1076_v59 = vpop.f32.mrf.mxu2 }
 0x100   : > { %v1643_v63 = vmax.f32 %v1579_v58, 0.0  ;;  %v1246_v2 = vadd.f32 %v3020_v36, %v1076_v59 }
 0x101   : > { %v999_v3 = vpop.f32.mrf.mxu0 }
 0x102   : > { %2284 = vmatmul.msk.bf16.gmra.mxu1 %vm861_vm2, %v2097_v51  ;;  %v2405_v5 = vpack.c.bf16 %v1643_v63, %v1642_v55  ;;  %2301 = vmatmul.msk.bf16.gmra.mxu3 %vm861_vm2, %v2233_v62  ;;  %v1543_v7 = vmul.f32 %v2947_v9, %v1246_v2  ;;  %v1169_v8 = vadd.f32 %v1168_v16, %v999_v3  ;;  %v2338_v16 = vld [vmem:[%s2827_s24 + $0xf4] sm:$0xf]  ;;  %v2340_v62 = vld [vmem:[%s2827_s24 + $0x104] sm:$0xf]  ;;  %v2100_v2 = vld [vmem:[%s2827_s24 + $0xf0] sm:$0xf] }
 0x103   : > { %v2105_v28 = vor.u32 %v2338_v16, %v2102_v23  ;;  %v2339_v3 = vld [vmem:[%s2827_s24 + $0xf4] sm:$0xf0] }
 0x104   : > { %2545 = vst [vmem:[%s2979_s29 + $0x20] sm:$0xff] %v2405_v5   ;;  %1038 = vmatmul.bf16.gmra.mxu0 %v2085_v1  ;;  %v1611_v11 = vadd.f32 %v2955_v13, %v1543_v7  ;;  %1118 = vmatmul.bf16.gmra.mxu2 %v2213_v4  ;;  %v1512_v19 = vmul.f32 %v2947_v9, %v1169_v8  ;;  %v2371_v7 = vld [vmem:[%s2827_s24 + $0x1f4] sm:$0xf0]  ;;  %s2665_s24 = scalar_lea.hbm %s3267_s4, 1024 }
 0x105   : > { %v3085_v12 = vpop.f32.mrf.mxu3  ;;  %v2113_v1 = vor.u32 %v2340_v62, %v2110_v15  ;;  %p2667_p2 = scmp.lt.s32.totalorder %s2665_s24, %s2661_s14 }
 0x106   : > { %v1675_v18 = vmax.f32 %v1611_v11, 0.0  ;;  %v1580_v25 = vadd.f32 %v2955_v13, %v1512_v19 }
 0x107   : > { %v1175_v36 = vpop.f32.mrf.mxu1  ;;  %v1079_v20 = vpop.f32.mrf.mxu2  ;;  %p2668_p3 = por %p2667_p2, %p2666_p1 }
 0x108   : > { %v2485_v40 = vpack.c.bf16 %v1675_v18, %v1674_v17  ;;  %v1249_v24 = vadd.f32 %v3033_v54, %v1079_v20  ;;  %v1644_v39 = vmax.f32 %v1580_v25, 0.0  ;;  %v2101_v18 = vor.u32 %v2339_v3, %v2100_v2 }
 0x109   : > { %v1001_v21 = vpop.f32.mrf.mxu0  ;;  %v2229_v20 = vor.u32 %v2371_v7, %v2228_v6  ;;  %p2669_p5 = pnand %p2668_p3, %p2664_p0 }
 0x10a   : > { %v1171_v22 = vadd.f32 %v1170_v35, %v1001_v21  ;;  %2561 = vst [vmem:[%s2979_s29 + $0xa0] sm:$0xff] %v2485_v40   ;;  %v1544_v35 = vmul.f32 %v2947_v9, %v1249_v24 }
 0x10c   : > { %v1513_v27 = vmul.f32 %v2947_v9, %v1171_v22  ;;  %v1612_v46 = vadd.f32 %v2955_v13, %v1544_v35 }
 0x10d   : > { %v3100_v54 = vpop.f32.mrf.mxu3 }
 0x10e   : > { %v1581_v31 = vadd.f32 %v2955_v13, %v1513_v27 }
 0x10f   : > { %v1178_v32 = vpop.f32.mrf.mxu1  ;;  %v1081_v42 = vpop.f32.mrf.mxu2 }
 0x110   : > { %v1645_v41 = vmax.f32 %v1581_v31, 0.0  ;;  %v1251_v43 = vadd.f32 %v3046_v0, %v1081_v42  ;;  %v1676_v0 = vmax.f32 %v1612_v46, 0.0 }
 0x111   : > { %v1004_v38 = vpop.f32.mrf.mxu0 }
 0x112   : > { %2285 = vmatmul.msk.bf16.gmra.mxu1 %vm861_vm2, %v2105_v28  ;;  %v2410_v45 = vpack.c.bf16 %v1645_v41, %v1644_v39  ;;  %v1545_v47 = vmul.f32 %v2947_v9, %v1251_v43  ;;  %v1174_v48 = vadd.f32 %v1173_v56, %v1004_v38 }
 0x114   : > { %2546 = vst [vmem:[%s2979_s29 + $0x28] sm:$0xff] %v2410_v45   ;;  %1043 = vmatmul.bf16.gmra.mxu0 %v2093_v10  ;;  %v1613_v49 = vadd.f32 %v2955_v13, %v1545_v47  ;;  %1123 = vmatmul.bf16.gmra.mxu2 %v2221_v44  ;;  %v1514_v52 = vmul.f32 %v2947_v9, %v1174_v48 }
 0x115   : > { %v3111_v56 = vpop.f32.mrf.mxu3 }
 0x116   : > { %v1677_v51 = vmax.f32 %v1613_v49, 0.0  ;;  %v1582_v63 = vadd.f32 %v2955_v13, %v1514_v52 }
 0x117   : > { %v1180_v50 = vpop.f32.mrf.mxu1  ;;  %v1084_v53 = vpop.f32.mrf.mxu2 }
 0x118   : > { %v2490_v58 = vpack.c.bf16 %v1677_v51, %v1676_v0  ;;  %v1254_v55 = vadd.f32 %v3059_v33, %v1084_v53  ;;  %v1646_v11 = vmax.f32 %v1582_v63, 0.0 }
 0x119   : > { %v1006_v60 = vpop.f32.mrf.mxu0 }
 0x11a   : > { %v1176_v61 = vadd.f32 %v1175_v36, %v1006_v60  ;;  %2562 = vst [vmem:[%s2979_s29 + $0xa8] sm:$0xff] %v2490_v58   ;;  %v1546_v8 = vmul.f32 %v2947_v9, %v1254_v55 }
 0x11c   : > { %v1515_v59 = vmul.f32 %v2947_v9, %v1176_v61  ;;  %v1614_v21 = vadd.f32 %v2955_v13, %v1546_v8 }
 0x11d   : > { %v1265_v23 = vpop.f32.mrf.mxu3 }
 0x11e   : > { %v1583_v4 = vadd.f32 %v2955_v13, %v1515_v59  ;;  %v1678_v27 = vmax.f32 %v1614_v21, 0.0 }
 0x11f   : > { %v1183_v5 = vpop.f32.mrf.mxu1  ;;  %v1086_v17 = vpop.f32.mrf.mxu2 }
 0x120   : > { %v1647_v36 = vmax.f32 %v1583_v4, 0.0  ;;  %v1256_v33 = vadd.f32 %v3072_v26, %v1086_v17 }
 0x121   : > { %v1009_v19 = vpop.f32.mrf.mxu0 }
 0x122   : > { %2286 = vmatmul.msk.bf16.gmra.mxu1 %vm861_vm2, %v2113_v1  ;;  %v2415_v40 = vpack.c.bf16 %v1647_v36, %v1646_v11  ;;  %v1547_v22 = vmul.f32 %v2947_v9, %v1256_v33  ;;  %v1179_v16 = vadd.f32 %v1178_v32, %v1009_v19 }
 0x124   : > { %2547 = vst [vmem:[%s2979_s29 + $0x30] sm:$0xff] %v2415_v40   ;;  %1048 = vmatmul.bf16.gmra.mxu0 %v2101_v18  ;;  %v1615_v24 = vadd.f32 %v2955_v13, %v1547_v22  ;;  %1128 = vmatmul.bf16.gmra.mxu2 %v2229_v20  ;;  %v1516_v28 = vmul.f32 %v2947_v9, %v1179_v16 }
 0x125   : > { %v1268_v42 = vpop.f32.mrf.mxu3 }
 0x126   : > { %v1679_v26 = vmax.f32 %v1615_v24, 0.0  ;;  %v1584_v32 = vadd.f32 %v2955_v13, %v1516_v28 }
 0x127   : > { %v1185_v25 = vpop.f32.mrf.mxu1  ;;  %v1089_v29 = vpop.f32.mrf.mxu2 }
 0x128   : > { %v2495_v30 = vpack.c.bf16 %v1679_v26, %v1678_v27  ;;  %v1259_v37 = vadd.f32 %v3085_v12, %v1089_v29  ;;  %v1648_v43 = vmax.f32 %v1584_v32, 0.0 }
 0x129   : > { %v1011_v31 = vpop.f32.mrf.mxu0 }
 0x12a   : > { %v1181_v57 = vadd.f32 %v1180_v50, %v1011_v31  ;;  %2563 = vst [vmem:[%s2979_s29 + $0xb0] sm:$0xff] %v2495_v30   ;;  %v1548_v10 = vmul.f32 %v2947_v9, %v1259_v37 }
 0x12c   : > { %v1517_v35 = vmul.f32 %v2947_v9, %v1181_v57  ;;  %v1616_v12 = vadd.f32 %v2955_v13, %v1548_v10 }
 0x12d   : > { %v1270_v60 = vpop.f32.mrf.mxu3 }
 0x12e   : > { %v1585_v39 = vadd.f32 %v2955_v13, %v1517_v35  ;;  %v1680_v51 = vmax.f32 %v1616_v12, 0.0 }
 0x12f   : > { %v1188_v41 = vpop.f32.mrf.mxu1  ;;  %v1091_v44 = vpop.f32.mrf.mxu2 }
 0x130   : > { %v1649_v38 = vmax.f32 %v1585_v39, 0.0  ;;  %v1261_v45 = vadd.f32 %v3100_v54, %v1091_v44 }
 0x131   : > { %v1014_v46 = vpop.f32.mrf.mxu0 }
 0x132   : > { %v2420_v47 = vpack.c.bf16 %v1649_v38, %v1648_v43  ;;  %v1549_v48 = vmul.f32 %v2947_v9, %v1261_v45  ;;  %v1184_v49 = vadd.f32 %v1183_v5, %v1014_v46 }
 0x134   : > { %2548 = vst [vmem:[%s2979_s29 + $0x38] sm:$0xff] %v2420_v47   ;;  %v1617_v50 = vadd.f32 %v2955_v13, %v1549_v48  ;;  %v1518_v53 = vmul.f32 %v2947_v9, %v1184_v49 }
 0x135   : > { %v1273_v11 = vpop.f32.mrf.mxu3 }
 0x136   : > { %v1681_v52 = vmax.f32 %v1617_v50, 0.0  ;;  %v1586_v55 = vadd.f32 %v2955_v13, %v1518_v53 }
 0x137   : > { %v1190_v0 = vpop.f32.mrf.mxu1  ;;  %v1094_v58 = vpop.f32.mrf.mxu2 }
 0x138   : > { %v2500_v61 = vpack.c.bf16 %v1681_v52, %v1680_v51  ;;  %v1264_v15 = vadd.f32 %v3111_v56, %v1094_v58  ;;  %v1650_v3 = vmax.f32 %v1586_v55, 0.0 }
 0x139   : > { %v1016_v54 = vpop.f32.mrf.mxu0 }
 0x13a   : > { %v1186_v62 = vadd.f32 %v1185_v25, %v1016_v54  ;;  %2564 = vst [vmem:[%s2979_s29 + $0xb8] sm:$0xff] %v2500_v61   ;;  %v1550_v2 = vmul.f32 %v2947_v9, %v1264_v15 }
 0x13c   : > { %v1519_v63 = vmul.f32 %v2947_v9, %v1186_v62  ;;  %v1618_v36 = vadd.f32 %v2955_v13, %v1550_v2 }
 0x13d   : > { %v1275_v26 = vpop.f32.mrf.mxu3 }
 0x13e   : > { %v1587_v59 = vadd.f32 %v2955_v13, %v1519_v63  ;;  %v1682_v19 = vmax.f32 %v1618_v36, 0.0 }
 0x13f   : > { %v1193_v1 = vpop.f32.mrf.mxu1  ;;  %v1096_v5 = vpop.f32.mrf.mxu2 }
 0x140   : > { %v1651_v4 = vmax.f32 %v1587_v59, 0.0  ;;  %v1266_v6 = vadd.f32 %v1265_v23, %v1096_v5 }
 0x141   : > { %v1019_v7 = vpop.f32.mrf.mxu0 }
 0x142   : > { %v2425_v8 = vpack.c.bf16 %v1651_v4, %v1650_v3  ;;  %v1551_v56 = vmul.f32 %v2947_v9, %v1266_v6  ;;  %v1189_v17 = vadd.f32 %v1188_v41, %v1019_v7 }
 0x144   : > { %2549 = vst [vmem:[%s2979_s29 + $0x40] sm:$0xff] %v2425_v8   ;;  %v1619_v18 = vadd.f32 %v2955_v13, %v1551_v56  ;;  %v1520_v40 = vmul.f32 %v2947_v9, %v1189_v17 }
 0x145   : > { %v1278_v44 = vpop.f32.mrf.mxu3 }
 0x146   : > { %v1683_v20 = vmax.f32 %v1619_v18, 0.0  ;;  %v1588_v25 = vadd.f32 %v2955_v13, %v1520_v40 }
 0x147   : > { %v1195_v33 = vpop.f32.mrf.mxu1  ;;  %v1099_v21 = vpop.f32.mrf.mxu2 }
 0x148   : > { %v2505_v22 = vpack.c.bf16 %v1683_v20, %v1682_v19  ;;  %v1269_v24 = vadd.f32 %v1268_v42, %v1099_v21  ;;  %v1652_v31 = vmax.f32 %v1588_v25, 0.0 }
 0x149   : > { %v1021_v16 = vpop.f32.mrf.mxu0 }
 0x14a   : > { %v1191_v23 = vadd.f32 %v1190_v0, %v1021_v16  ;;  %2565 = vst [vmem:[%s2979_s29 + $0xc0] sm:$0xff] %v2505_v22   ;;  %v1552_v30 = vmul.f32 %v2947_v9, %v1269_v24 }
 0x14c   : > { %v1521_v27 = vmul.f32 %v2947_v9, %v1191_v23  ;;  %v1620_v41 = vadd.f32 %v2955_v13, %v1552_v30 }
 0x14d   : > { %v1280_v15 = vpop.f32.mrf.mxu3 }
 0x14e   : > { %v1589_v28 = vadd.f32 %v2955_v13, %v1521_v27  ;;  %v1684_v45 = vmax.f32 %v1620_v41, 0.0 }
 0x14f   : > { %v1198_v29 = vpop.f32.mrf.mxu1  ;;  %v1101_v37 = vpop.f32.mrf.mxu2 }
 0x150   : > { %v1653_v57 = vmax.f32 %v1589_v28, 0.0  ;;  %v1271_v32 = vadd.f32 %v1270_v60, %v1101_v37 }
 0x151   : > { %v1024_v35 = vpop.f32.mrf.mxu0 }
 0x152   : > { %v2430_v39 = vpack.c.bf16 %v1653_v57, %v1652_v31  ;;  %v1553_v42 = vmul.f32 %v2947_v9, %v1271_v32  ;;  %v1194_v10 = vadd.f32 %v1193_v1, %v1024_v35 }
 0x154   : > { %2550 = vst [vmem:[%s2979_s29 + $0x48] sm:$0xff] %v2430_v39   ;;  %v1621_v43 = vadd.f32 %v2955_v13, %v1553_v42  ;;  %v1522_v47 = vmul.f32 %v2947_v9, %v1194_v10 }
 0x155   : > { %v1283_v18 = vpop.f32.mrf.mxu3 }
 0x156   : > { %v1685_v46 = vmax.f32 %v1621_v43, 0.0  ;;  %v1590_v51 = vadd.f32 %v2955_v13, %v1522_v47 }
 0x157   : > { %v1200_v38 = vpop.f32.mrf.mxu1  ;;  %v1104_v12 = vpop.f32.mrf.mxu2 }
 0x158   : > { %v2510_v48 = vpack.c.bf16 %v1685_v46, %v1684_v45  ;;  %v1274_v0 = vadd.f32 %v1273_v11, %v1104_v12  ;;  %v1654_v61 = vmax.f32 %v1590_v51, 0.0 }
 0x159   : > { %v1026_v49 = vpop.f32.mrf.mxu0 }
 0x15a   : > { %v1196_v50 = vadd.f32 %v1195_v33, %v1026_v49  ;;  %2566 = vst [vmem:[%s2979_s29 + $0xc8] sm:$0xff] %v2510_v48   ;;  %v1554_v60 = vmul.f32 %v2947_v9, %v1274_v0 }
 0x15c   : > { %v1523_v52 = vmul.f32 %v2947_v9, %v1196_v50  ;;  %v1622_v1 = vadd.f32 %v2955_v13, %v1554_v60 }
 0x15d   : > { %v1285_v31 = vpop.f32.mrf.mxu3 }
 0x15e   : > { %v1591_v53 = vadd.f32 %v2955_v13, %v1523_v52  ;;  %v1686_v6 = vmax.f32 %v1622_v1, 0.0 }
 0x15f   : > { %v1203_v58 = vpop.f32.mrf.mxu1  ;;  %v1106_v62 = vpop.f32.mrf.mxu2 }
 0x160   : > { %v1655_v54 = vmax.f32 %v1591_v53, 0.0  ;;  %v1276_v55 = vadd.f32 %v1275_v26, %v1106_v62 }
 0x161   : > { %v1029_v63 = vpop.f32.mrf.mxu0 }
 0x162   : > { %v2435_v59 = vpack.c.bf16 %v1655_v54, %v1654_v61  ;;  %v1555_v2 = vmul.f32 %v2947_v9, %v1276_v55  ;;  %v1199_v3 = vadd.f32 %v1198_v29, %v1029_v63 }
 0x164   : > { %2551 = vst [vmem:[%s2979_s29 + $0x50] sm:$0xff] %v2435_v59   ;;  %v1623_v4 = vadd.f32 %v2955_v13, %v1555_v2  ;;  %v1524_v8 = vmul.f32 %v2947_v9, %v1199_v3 }
 0x165   : > { %v1288_v12 = vpop.f32.mrf.mxu3 }
 0x166   : > { %v1687_v7 = vmax.f32 %v1623_v4, 0.0  ;;  %v1592_v19 = vadd.f32 %v2955_v13, %v1524_v8 }
 0x167   : > { %v1205_v5 = vpop.f32.mrf.mxu1  ;;  %v1109_v11 = vpop.f32.mrf.mxu2 }
 0x168   : > { %v2515_v36 = vpack.c.bf16 %v1687_v7, %v1686_v6  ;;  %v1279_v33 = vadd.f32 %v1278_v44, %v1109_v11  ;;  %v1656_v16 = vmax.f32 %v1592_v19, 0.0 }
 0x169   : > { %v1031_v56 = vpop.f32.mrf.mxu0 }
 0x16a   : > { %v1201_v17 = vadd.f32 %v1200_v38, %v1031_v56  ;;  %2567 = vst [vmem:[%s2979_s29 + $0xd0] sm:$0xff] %v2515_v36   ;;  %v1556_v22 = vmul.f32 %v2947_v9, %v1279_v33 }
 0x16c   : > { %v1525_v20 = vmul.f32 %v2947_v9, %v1201_v17  ;;  %v1624_v28 = vadd.f32 %v2955_v13, %v1556_v22 }
 0x16d   : > { %v1290_v1 = vpop.f32.mrf.mxu3 }
 0x16e   : > { %v1593_v40 = vadd.f32 %v2955_v13, %v1525_v20  ;;  %v1688_v32 = vmax.f32 %v1624_v28, 0.0 }
 0x16f   : > { %v1208_v21 = vpop.f32.mrf.mxu1  ;;  %v1111_v24 = vpop.f32.mrf.mxu2 }
 0x170   : > { %v1657_v23 = vmax.f32 %v1593_v40, 0.0  ;;  %v1281_v25 = vadd.f32 %v1280_v15, %v1111_v24 }
 0x171   : > { %v1034_v27 = vpop.f32.mrf.mxu0 }
 0x172   : > { %v2440_v26 = vpack.c.bf16 %v1657_v23, %v1656_v16  ;;  %v1557_v29 = vmul.f32 %v2947_v9, %v1281_v25  ;;  %v1204_v30 = vadd.f32 %v1203_v58, %v1034_v27 }
 0x174   : > { %2552 = vst [vmem:[%s2979_s29 + $0x58] sm:$0xff] %v2440_v26   ;;  %v1625_v57 = vadd.f32 %v2955_v13, %v1557_v29  ;;  %v1526_v39 = vmul.f32 %v2947_v9, %v1204_v30 }
 0x175   : > { %v1293_v40 = vpop.f32.mrf.mxu3 }
 0x176   : > { %v1689_v35 = vmax.f32 %v1625_v57, 0.0  ;;  %v1594_v44 = vadd.f32 %v2955_v13, %v1526_v39 }
 0x177   : > { %v1210_v37 = vpop.f32.mrf.mxu1  ;;  %v1114_v41 = vpop.f32.mrf.mxu2 }
 0x178   : > { %v2520_v42 = vpack.c.bf16 %v1689_v35, %v1688_v32  ;;  %v1284_v38 = vadd.f32 %v1283_v18, %v1114_v41  ;;  %v1658_v49 = vmax.f32 %v1594_v44, 0.0 }
 0x179   : > { %v1036_v10 = vpop.f32.mrf.mxu0 }
 0x17a   : > { %v1206_v43 = vadd.f32 %v1205_v5, %v1036_v10  ;;  %2568 = vst [vmem:[%s2979_s29 + $0xd8] sm:$0xff] %v2520_v42   ;;  %v1558_v48 = vmul.f32 %v2947_v9, %v1284_v38 }
 0x17c   : > { %v1527_v45 = vmul.f32 %v2947_v9, %v1206_v43  ;;  %v1626_v58 = vadd.f32 %v2955_v13, %v1558_v48 }
 0x17d   : > { %v1295_v32 = vpop.f32.mrf.mxu3 }
 0x17e   : > { %v1595_v46 = vadd.f32 %v2955_v13, %v1527_v45  ;;  %v1690_v15 = vmax.f32 %v1626_v58, 0.0 }
 0x17f   : > { %v1213_v47 = vpop.f32.mrf.mxu1  ;;  %v1116_v0 = vpop.f32.mrf.mxu2 }
 0x180   : > { %v1659_v50 = vmax.f32 %v1595_v46, 0.0  ;;  %v1286_v51 = vadd.f32 %v1285_v31, %v1116_v0 }
 0x181   : > { %v1039_v52 = vpop.f32.mrf.mxu0 }
 0x182   : > { %v2445_v53 = vpack.c.bf16 %v1659_v50, %v1658_v49  ;;  %v1559_v60 = vmul.f32 %v2947_v9, %v1286_v51  ;;  %v1209_v61 = vadd.f32 %v1208_v21, %v1039_v52  ;;  %v2643_v50 = vld [vmem:[%s3265_s2] ss:$0 sm:$0xff] }
 0x184   : > { %2553 = vst [vmem:[%s2979_s29 + $0x60] sm:$0xff] %v2445_v53   ;;  %v1627_v54 = vadd.f32 %v2955_v13, %v1559_v60  ;;  %v1528_v63 = vmul.f32 %v2947_v9, %v1209_v61 }
 0x185   : > { %v1298_v52 = vpop.f32.mrf.mxu3 }
 0x186   : > { %v1691_v55 = vmax.f32 %v1627_v54, 0.0  ;;  %v1596_v6 = vadd.f32 %v2955_v13, %v1528_v63 }
 0x187   : > { %v1215_v62 = vpop.f32.mrf.mxu1  ;;  %v1119_v59 = vpop.f32.mrf.mxu2 }
 0x188   : > { %v2525_v2 = vpack.c.bf16 %v1691_v55, %v1690_v15  ;;  %v1289_v5 = vadd.f32 %v1288_v12, %v1119_v59  ;;  %v1660_v56 = vmax.f32 %v1596_v6, 0.0 }
 0x189   : > { %v1041_v3 = vpop.f32.mrf.mxu0 }
 0x18a   : > { %v1211_v4 = vadd.f32 %v1210_v37, %v1041_v3  ;;  %2569 = vst [vmem:[%s2979_s29 + $0xe0] sm:$0xff] %v2525_v2   ;;  %v1560_v36 = vmul.f32 %v2947_v9, %v1289_v5 }
 0x18c   : > { %v1529_v7 = vmul.f32 %v2947_v9, %v1211_v4  ;;  %v1628_v21 = vadd.f32 %v2955_v13, %v1560_v36 }
 0x18e   : > { %v1597_v8 = vadd.f32 %v2955_v13, %v1529_v7  ;;  %v1692_v25 = vmax.f32 %v1628_v21, 0.0 }
 0x18f   : > { %v1218_v11 = vpop.f32.mrf.mxu1  ;;  %v1121_v18 = vpop.f32.mrf.mxu2 }
 0x190   : > { %v1661_v17 = vmax.f32 %v1597_v8, 0.0  ;;  %v1291_v33 = vadd.f32 %v1290_v1, %v1121_v18 }
 0x191   : > { %v1044_v19 = vpop.f32.mrf.mxu0 }
 0x192   : > { %v2450_v20 = vpack.c.bf16 %v1661_v17, %v1660_v56  ;;  %v1561_v22 = vmul.f32 %v2947_v9, %v1291_v33  ;;  %v1214_v16 = vadd.f32 %v1213_v47, %v1044_v19 }
 0x194   : > { %2554 = vst [vmem:[%s2979_s29 + $0x68] sm:$0xff] %v2450_v20   ;;  %v1629_v23 = vadd.f32 %v2955_v13, %v1561_v22  ;;  %v1530_v26 = vmul.f32 %v2947_v9, %v1214_v16 }
 0x196   : > { %v1693_v27 = vmax.f32 %v1629_v23, 0.0  ;;  %v1598_v37 = vadd.f32 %v2955_v13, %v1530_v26 }
 0x197   : > { %v1220_v24 = vpop.f32.mrf.mxu1  ;;  %v1124_v28 = vpop.f32.mrf.mxu2 }
 0x198   : > { %v2530_v29 = vpack.c.bf16 %v1693_v27, %v1692_v25  ;;  %v1294_v57 = vadd.f32 %v1293_v40, %v1124_v28  ;;  %v1662_v10 = vmax.f32 %v1598_v37, 0.0 }
 0x199   : > { %v1046_v30 = vpop.f32.mrf.mxu0 }
 0x19a   : > { %v1216_v31 = vadd.f32 %v1215_v62, %v1046_v30  ;;  %2570 = vst [vmem:[%s2979_s29 + $0xe8] sm:$0xff] %v2530_v29   ;;  %v1562_v42 = vmul.f32 %v2947_v9, %v1294_v57 }
 0x19c   : > { %v1531_v35 = vmul.f32 %v2947_v9, %v1216_v31  ;;  %v1630_v12 = vadd.f32 %v2955_v13, %v1562_v42 }
 0x19e   : > { %v1599_v39 = vadd.f32 %v2955_v13, %v1531_v35 }
 0x19f   : > { %v1223_v41 = vpop.f32.mrf.mxu1  ;;  %v1126_v38 = vpop.f32.mrf.mxu2 }
 0x1a0   : > { %v1663_v43 = vmax.f32 %v1599_v39, 0.0  ;;  %v1224_v44 = vadd.f32 %v1223_v41, %v2957_v14  ;;  %v1296_v45 = vadd.f32 %v1295_v32, %v1126_v38  ;;  %v1694_v14 = vmax.f32 %v1630_v12, 0.0 }
 0x1a1   : > { %v1049_v46 = vpop.f32.mrf.mxu0 }
 0x1a2   : > { %v2455_v47 = vpack.c.bf16 %v1663_v43, %v1662_v10  ;;  %v1563_v48 = vmul.f32 %v2947_v9, %v1296_v45  ;;  %v1219_v49 = vadd.f32 %v1218_v11, %v1049_v46  ;;  %v1534_v0 = vmul.f32 %v2643_v50, %v1224_v44  ;;  %v2644_v9 = vld [vmem:[%s3266_s3] ss:$0 sm:$0xff]  ;;  %v1300_v11 = vpop.f32.mrf.mxu3 }
 0x1a4   : > { %2555 = vst [vmem:[%s2979_s29 + $0x70] sm:$0xff] %v2455_v47   ;;  %v1631_v51 = vadd.f32 %v2955_v13, %v1563_v48  ;;  %v1532_v61 = vmul.f32 %v2643_v50, %v1219_v49  ;;  %v1602_v62 = vadd.f32 %v2644_v9, %v1534_v0 }
 0x1a6   : > { %v1695_v58 = vmax.f32 %v1631_v51, 0.0  ;;  %v1600_v2 = vadd.f32 %v2644_v9, %v1532_v61  ;;  %v1666_v4 = vmax.f32 %v1602_v62, 0.0 }
 0x1a7   : > { %v1225_v53 = vpop.f32.mrf.mxu1  ;;  %v1129_v54 = vpop.f32.mrf.mxu2 }
 0x1a8   : > { %v1226_v60 = vadd.f32 %v1225_v53, %v2975_v34  ;;  %v2535_v15 = vpack.c.bf16 %v1695_v58, %v1694_v14  ;;  %v1299_v1 = vadd.f32 %v1298_v52, %v1129_v54  ;;  %v1664_v8 = vmax.f32 %v1600_v2, 0.0 }
 0x1a9   : > { %v1051_v63 = vpop.f32.mrf.mxu0 }
 0x1aa   : > { %v1535_v55 = vmul.f32 %v2643_v50, %v1226_v60  ;;  %v1221_v59 = vadd.f32 %v1220_v24, %v1051_v63  ;;  %2571 = vst [vmem:[%s2979_s29 + $0xf0] sm:$0xff] %v2535_v15   ;;  %v1564_v7 = vmul.f32 %v2643_v50, %v1299_v1 }
 0x1ac   : > { %v1603_v13 = vadd.f32 %v2644_v9, %v1535_v55  ;;  %v1533_v3 = vmul.f32 %v2643_v50, %v1221_v59  ;;  %v1632_v33 = vadd.f32 %v2644_v9, %v1564_v7 }
 0x1ae   : > { %v1667_v34 = vmax.f32 %v1603_v13, 0.0  ;;  %v1601_v5 = vadd.f32 %v2644_v9, %v1533_v3  ;;  %v1696_v40 = vmax.f32 %v1632_v33, 0.0 }
 0x1af   : > { %v1131_v56 = vpop.f32.mrf.mxu2 }
 0x1b0   : > { %v2465_v6 = vpack.c.bf16 %v1667_v34, %v1666_v4  ;;  %v1665_v36 = vmax.f32 %v1601_v5, 0.0  ;;  %v1301_v17 = vadd.f32 %v1300_v11, %v1131_v56 }
 0x1b2   : > { %2557 = vst [vmem:[%s2979_s29 + $0x80] sm:$0xff] %v2465_v6   ;;  %v2460_v18 = vpack.c.bf16 %v1665_v36, %v1664_v8  ;;  %v1565_v19 = vmul.f32 %v2643_v50, %v1301_v17 }
 0x1b4   : > { %2556 = vst [vmem:[%s2979_s29 + $0x78] sm:$0xff] %v2460_v18   ;;  %v1633_v20 = vadd.f32 %v2644_v9, %v1565_v19 }
 0x1b6   : > { %v1697_v21 = vmax.f32 %v1633_v20, 0.0 }
 0x1b8   : > { %v2540_v22 = vpack.c.bf16 %v1697_v21, %v1696_v40 }
 0x1ba   : > { %2572 = vst [vmem:[%s2979_s29 + $0xf8] sm:$0xff] %v2540_v22  }
 0x1bb   : > { %2672 = shalt.err (!%p2669_p5)
}
 0x1bc   : > { %s2726_s22 = smov 64   ;;  %s2727_s29 = smov 4  }
 0x1bd   : > { %2583 = dma.vmem_to_hbm [thread:$0]  (%p2793_p4), %s1841_s11, 4096, %s1843_s18, %s1827_s12, %s2726_s22, %s2726_s22, %s2727_s29  }
 0x1be PF: > { %p2589_p6 = scmp.ge.s32.totalorder %s2723_s20, 2  ;;  %s1857_s6 = sand.u32 1, %s2703_s15  }
 0x1bf   : > { %s1858_s7 = scalar_lea.sflag [#allocation4], %s1857_s6 }
 0x1c0   : > { %p2586_p7 = pnand %p2589_p6, %p2800_p8 }
 0x1c2   : > { %p2587_p9 = pneg %p2586_p7 }
 0x1c4   : > { %2698 = dma.done.wait (%p2587_p9), %s1858_s7, 4096  }
 0x1c5   : > { %2700 = vsyncadd (%p2587_p9), %s1858_s7, 4294963200  ;;  %s17_s20 = sadd.s32 1, %s2723_s20   ;;  %s3270_s15 = smov %s2707_s16 }
 0x1c6   : > { %p14_p10 = scmp.ge.s32.totalorder %s17_s20, 6   ;;  %s3271_s16 = smov %s2711_s17 }
 0x1c7   : > { %s3272_s17 = smov %s2806_s28  ;;  %s3273_s18 = smov %s2719_s19 }
 0x1c8   : > { %s3274_s19 = smov %s3276_s23  ;;  %16 = sbr.rel (!%p14_p10) target bundleno = 4 (0x4), region = 88 }
 0x1cd   :  { %1864 = vsyncpa [#allocation4], 1 }
 0x1ce   :  { %1866 = vsyncpa [#allocation4 + $0x1], 1 }

</bundles_post_ra>
